<compile_context>
chip_gen: v7x
topology: tpu7x:2x2x1
jax: 0.10.0
libtpu: 0.0.40
codegen_flags: <defaults>
</compile_context>

<pallas_src>
import jax
import jax.numpy as jnp
from jax import lax
from jax.experimental import pallas as pl
from jax.experimental.pallas import tpu as pltpu


# ============================================================================
# Kernel 1: fused Conv2d(3x3, s=1, p=1) + BatchNorm(eval) + ReLU + MaxPool(2,2)
#           one image per grid step, single im2col MXU matmul (K = 9*Cin)
# ============================================================================
def conv_bn_relu_pool_kernel(x_ref, w_ref, scale_ref, bias_ref, o_ref,
                             xpad_ref, patch_ref):
    # x_ref:     (H, W, Cin)         one image (batch dim squeezed by BlockSpec)
    # w_ref:     (9*Cp, Cout) bf16   im2col weights, row = (3*dy+dx)*Cp + cin
    # scale_ref: (1, Cout) f32       gamma / sqrt(running_var + eps)
    # bias_ref:  (1, Cout) f32       beta + (conv_bias - mean) * scale
    # o_ref:     (Ho, Wo, Cout)      pooled output
    # xpad_ref:  (H+2, W+2, Cp) f32  VMEM scratch: spatial halo + channel pad
    # patch_ref: (H*W, 9*Cp) bf16    VMEM scratch: im2col matrix
    H, W, Cin = x_ref.shape
    Cp = xpad_ref.shape[-1]
    Ho, Wo, Cout = o_ref.shape

    # halo + channel padding built in VMEM (no HBM-side jnp.pad in the wrapper)
    xpad_ref[...] = jnp.zeros_like(xpad_ref)
    xpad_ref[1:H + 1, 1:W + 1, 0:Cin] = x_ref[...].astype(xpad_ref.dtype)

    # im2col: all 9 taps fused along the contraction dim (K = 9*Cp)
    for t in range(9):
        dy, dx = t // 3, t % 3
        patch_ref[:, t * Cp:(t + 1) * Cp] = (
            xpad_ref[dy:dy + H, dx:dx + W, :]
            .reshape(H * W, Cp).astype(patch_ref.dtype))

    # single MXU matmul, bf16 operands, f32 accumulation
    acc = jnp.dot(patch_ref[...], w_ref[...],
                  preferred_element_type=jnp.float32)          # (H*W, Cout)

    # fused BN (eval, folded) + ReLU
    y = jnp.maximum(acc * scale_ref[...] + bias_ref[...], 0.0)

    # vectorized 2x2 stride-2 max pool, single store
    y = y.reshape(Ho, 2, W, Cout)
    rows = jnp.maximum(y[:, 0], y[:, 1])                       # (Ho, W, Cout)
    rows = rows.reshape(Ho, Wo, 2, Cout)
    o_ref[...] = jnp.maximum(rows[:, :, 0], rows[:, :, 1]).astype(o_ref.dtype)


def conv_block(x, w, scale, bias, out_dtype=jnp.bfloat16):
    """x: (B, H, W, Cin) NHWC -> (B, H//2, W//2, Cout). Gridded over batch."""
    B, H, W, Cin = x.shape
    assert H % 2 == 0 and W % 2 == 0, "MaxPool2d(2,2) truncation not implemented"
    Cp = w.shape[0] // 9
    Cout = w.shape[1]
    assert Cin <= Cp, (Cin, Cp)
    Ho, Wo = H // 2, W // 2
    return pl.pallas_call(
        conv_bn_relu_pool_kernel,
        out_shape=jax.ShapeDtypeStruct((B, Ho, Wo, Cout), out_dtype),
        grid=(B,),
        in_specs=[
            pl.BlockSpec((None, H, W, Cin), lambda b: (b, 0, 0, 0)),
            pl.BlockSpec((9 * Cp, Cout), lambda b: (0, 0)),
            pl.BlockSpec((1, Cout), lambda b: (0, 0)),
            pl.BlockSpec((1, Cout), lambda b: (0, 0)),
        ],
        out_specs=pl.BlockSpec((None, Ho, Wo, Cout), lambda b: (b, 0, 0, 0)),
        scratch_shapes=[pltpu.VMEM((H + 2, W + 2, Cp), jnp.float32),
                        pltpu.VMEM((H * W, 9 * Cp), jnp.bfloat16)],
        compiler_params=pltpu.CompilerParams(
            dimension_semantics=("parallel",),          # batch-parallel (megacore / v7x)
            vmem_limit_bytes=32 * 1024 * 1024),         # explicit budget (v7x: 64 MiB phys)
    )(x, w, scale, bias)


# ============================================================================
# Kernel 2: BidirectionalLSTM = bi-LSTM(hidden H) + Linear(2H, Nout)
#           fused gates [i|f|o|g], hoisted input projection, interleaved
#           fwd/bwd recurrences, lane-dense packed hidden-state scratch
# ============================================================================
def bilstm_kernel(x_ref, wihf_ref, whhf_ref, bf_ref,
                  wihb_ref, whhb_ref, bb_ref, we_ref, be_ref,
                  o_ref, xpf_ref, xpb_ref, hs_ref):
    # x_ref:   (T, B, Nin)  time-major (like torch.nn.LSTM default)
    # wih*:    (Nin, 4H) bf16 fused per-gate input weights, column order [i|f|o|g]
    # whh*:    (H, 4H)   bf16 fused recurrent weights, same order
    # b*:      (1, 4H)   f32  b_ih + b_hh
    # we_ref:  (2H, Nout) bf16 Linear(2H, Nout) weight (rows [fwd | bwd])
    # be_ref:  (1, Nout) f32
    # o_ref:   (T, B, Nout)
    # xpf/xpb: (T, B, 4H) f32 scratch -- hoisted input projections
    # hs_ref:  (T, B, 2H) f32 scratch -- packed [fwd | bwd] hidden states (lane-dense)
    T, B, Nin = x_ref.shape
    H = whhf_ref.shape[0]

    # hoisted input projections: one (T*B, Nin) @ (Nin, 4H) bf16 matmul per direction
    x2 = x_ref[...].reshape(T * B, Nin).astype(jnp.bfloat16)
    xpf_ref[...] = (jnp.dot(x2, wihf_ref[...], preferred_element_type=jnp.float32)
                    + bf_ref[...]).reshape(T, B, 4 * H)
    xpb_ref[...] = (jnp.dot(x2, wihb_ref[...], preferred_element_type=jnp.float32)
                    + bb_ref[...]).reshape(T, B, 4 * H)

    whhf = whhf_ref[...]        # hoisted invariant loads
    whhb = whhb_ref[...]

    def lstm_step(g, c):
        # gate order [i | f | o | g]: one sigmoid over 3H lanes + one tanh over H
        sg = jax.nn.sigmoid(g[:, :3 * H])
        zg = jnp.tanh(g[:, 3 * H:])
        c_new = sg[:, H:2 * H] * c + sg[:, :H] * zg
        h_new = sg[:, 2 * H:] * jnp.tanh(c_new)
        return h_new, c_new

    def body(k, carry):
        hf, cf, hb, cb = carry
        kb = T - 1 - k
        # fwd(t=k) and bwd(t=T-1-k) are independent chains; issuing their two
        # small recurrence matmuls back-to-back lets the MXU latencies overlap.
        gf = xpf_ref[k] + jnp.dot(hf.astype(jnp.bfloat16), whhf,
                                  preferred_element_type=jnp.float32)
        gb = xpb_ref[kb] + jnp.dot(hb.astype(jnp.bfloat16), whhb,
                                   preferred_element_type=jnp.float32)
        hf, cf = lstm_step(gf, cf)
        hb, cb = lstm_step(gb, cb)
        hs_ref[k, :, 0:H] = hf              # packed (2H = 128 lanes) scratch
        hs_ref[kb, :, H:2 * H] = hb
        return hf, cf, hb, cb

    z = jnp.zeros((B, H), jnp.float32)
    lax.fori_loop(0, T, body, (z, z, z, z), unroll=2)

    # batched embedding: ONE (T*B, 2H) @ (2H, Nout) matmul over the packed states
    out = (jnp.dot(hs_ref[...].reshape(T * B, 2 * H).astype(jnp.bfloat16),
                   we_ref[...], preferred_element_type=jnp.float32)
           + be_ref[...])
    o_ref[...] = out.reshape(T, B, o_ref.shape[-1]).astype(o_ref.dtype)


def bilstm_layer(x, params, out_dtype=jnp.bfloat16):
    """x: (T, B, Nin) -> (T, B, Nout)."""
    wihf, whhf, bf, wihb, whhb, bb, we, be = params
    T, B, Nin = x.shape
    assert Nin == wihf.shape[0], (Nin, wihf.shape)   # contract only real features
    H = whhf.shape[0]
    Nout = we.shape[1]
    return pl.pallas_call(
        bilstm_kernel,
        out_shape=jax.ShapeDtypeStruct((T, B, Nout), out_dtype),
        in_specs=[pl.BlockSpec(memory_space=pltpu.MemorySpace.VMEM)] * 9,
        out_specs=pl.BlockSpec(memory_space=pltpu.MemorySpace.VMEM),
        scratch_shapes=[pltpu.VMEM((T, B, 4 * H), jnp.float32),
                        pltpu.VMEM((T, B, 4 * H), jnp.float32),
                        pltpu.VMEM((T, B, 2 * H), jnp.float32)],
        compiler_params=pltpu.CompilerParams(
            vmem_limit_bytes=32 * 1024 * 1024),
    )(x, wihf, whhf, bf, wihb, whhb, bb, we, be)


# ============================================================================
# Full CRNN forward (glue: layout transposes only)
# ============================================================================
def crnn_forward(x_nchw, kparams, num_classes):
    x = jnp.transpose(x_nchw, (0, 2, 3, 1))                      # NCHW -> NHWC
    x = conv_block(x, *kparams["conv0"])                         # (B, H/2, W/2, 32) bf16
    x = conv_block(x, *kparams["conv1"])                         # (B, H/4, W/4, 64) bf16
    B, Hc, Wc, C = x.shape
    # PyTorch: (b,c,h,w).reshape(b, c*h, w).permute(2,0,1) -> feature idx = c*Hc + h
    assert C * Hc == kparams["rnn1"][0].shape[0], "CNN feature dim must match rnn1 n_in"
    seq = jnp.transpose(x, (2, 0, 3, 1)).reshape(Wc, B, C * Hc)  # (T, B, 128) bf16
    y = bilstm_layer(seq, kparams["rnn1"], out_dtype=jnp.bfloat16)   # (T, B, 64)
    y = bilstm_layer(y, kparams["rnn2"], out_dtype=jnp.float32)      # (T, B, num_classes)
    return jnp.transpose(y, (1, 0, 2))                           # (B, T, num_classes)


# ============================================================================
# Pure-JAX f32 reference for numerical verification
# ============================================================================
def conv_block_ref(x, w_hwio, scale, bias):
    y = lax.conv_general_dilated(x, w_hwio, window_strides=(1, 1), padding="SAME",
                                 dimension_numbers=("NHWC", "HWIO", "NHWC"))
    y = jnp.maximum(y * scale.reshape(1, 1, 1, -1) + bias.reshape(1, 1, 1, -1), 0.0)
    B, H, W, C = y.shape
    return y.reshape(B, H // 2, 2, W // 2, 2, C).max(axis=(2, 4))


def bilstm_ref(x, params):
    wihf, whhf, bf, wihb, whhb, bb, we, be = params
    T, B, _ = x.shape
    H = whhf.shape[0]

    def run(xs, wih, whh, b):
        h = jnp.zeros((B, H), jnp.float32)
        c = jnp.zeros((B, H), jnp.float32)
        outs = []
        for t in range(xs.shape[0]):
            g = xs[t] @ wih + h @ whh + b
            i = jax.nn.sigmoid(g[:, :H])
            f = jax.nn.sigmoid(g[:, H:2 * H])
            gg = jnp.tanh(g[:, 2 * H:3 * H])
            o = jax.nn.sigmoid(g[:, 3 * H:])
            c = f * c + i * gg
            h = o * jnp.tanh(c)
            outs.append(h)
        return jnp.stack(outs)

    hf = run(x, wihf, whhf, bf)
    hb = run(x[::-1], wihb, whhb, bb)[::-1]
    return jnp.concatenate([hf, hb], axis=-1) @ we + be


def crnn_forward_ref(x_nchw, rparams):
    x = jnp.transpose(x_nchw, (0, 2, 3, 1))
    x = conv_block_ref(x, *rparams["conv0"])
    x = conv_block_ref(x, *rparams["conv1"])
    B, Hc, Wc, C = x.shape
    seq = jnp.transpose(x, (2, 0, 3, 1)).reshape(Wc, B, C * Hc)
    y = bilstm_ref(seq, rparams["rnn1"])
    y = bilstm_ref(y, rparams["rnn2"])
    return jnp.transpose(y, (1, 0, 2))


# ============================================================================
# Deterministic parameter init (PyTorch shapes -> kernel layout + ref layout)
# ============================================================================
def init_params(key, num_classes):
    ks = iter(jax.random.split(key, 64))

    def nrm(shape, scale=0.1):
        return (scale * jax.random.normal(next(ks), shape)).astype(jnp.float32)

    def conv_bn(cin, cout, cin_pad):
        w = nrm((cout, cin, 3, 3))            # PyTorch OIHW
        b = nrm((cout,))
        gamma = 1.0 + nrm((cout,))
        beta = nrm((cout,))
        mean = nrm((cout,))
        var = jnp.abs(nrm((cout,))) + 0.5
        scale = gamma / jnp.sqrt(var + 1e-5)  # BN eval-mode fold
        bias = beta + (b - mean) * scale
        w_hwio = jnp.transpose(w, (2, 3, 1, 0))                         # (3,3,cin,cout)
        w_pad = jnp.pad(w_hwio, ((0, 0), (0, 0), (0, cin_pad - cin), (0, 0)))
        w_k = w_pad.reshape(9 * cin_pad, cout).astype(jnp.bfloat16)     # im2col layout
        kernel = (w_k, scale.reshape(1, cout), bias.reshape(1, cout))
        ref = (w_hwio, scale, bias)
        return kernel, ref

    def bilstm(n_in, n_hidden, n_out):
        H = n_hidden

        def reorder(a):  # PyTorch gate rows [i, f, g, o] -> kernel order [i, f, o, g]
            return jnp.concatenate(
                [a[0:H], a[H:2 * H], a[3 * H:4 * H], a[2 * H:3 * H]], axis=0)

        def direction():
            w_ih = nrm((4 * H, n_in))         # PyTorch weight_ih_l0, gates [i,f,g,o]
            w_hh = nrm((4 * H, H))
            b_ih = nrm((4 * H,))
            b_hh = nrm((4 * H,))
            b = b_ih + b_hh
            kernel = (jnp.transpose(reorder(w_ih)).astype(jnp.bfloat16),   # (n_in, 4H)
                      jnp.transpose(reorder(w_hh)).astype(jnp.bfloat16),   # (H, 4H)
                      reorder(b).reshape(1, 4 * H))
            ref = (jnp.transpose(w_ih), jnp.transpose(w_hh), b.reshape(1, 4 * H))
            return kernel, ref

        kf, rf = direction()
        kb, rb = direction()
        ew = nrm((n_out, 2 * H))              # PyTorch Linear weight
        eb = nrm((n_out,))
        we = jnp.transpose(ew)                # (2H, n_out), rows [fwd | bwd]
        be = eb.reshape(1, n_out)
        kernel = kf + kb + (we.astype(jnp.bfloat16), be)
        ref = rf + rb + (we, be)
        return kernel, ref

    c0_k, c0_r = conv_bn(3, 32, cin_pad=8)
    c1_k, c1_r = conv_bn(32, 64, cin_pad=32)   # contract only the 32 real channels
    r1_k, r1_r = bilstm(128, 64, 64)
    r2_k, r2_r = bilstm(64, 64, num_classes)   # contract only the 64 real features
    kparams = dict(conv0=c0_k, conv1=c1_k, rnn1=r1_k, rnn2=r2_k)
    rparams = dict(conv0=c0_r, conv1=c1_r, rnn1=r1_r, rnn2=r2_r)
    return kparams, rparams


if __name__ == "__main__":
    num_classes = 10
    key = jax.random.PRNGKey(0)
    pkey, xkey = jax.random.split(key)
    kparams, rparams = init_params(pkey, num_classes)

    # input height 8 so that after two 2x2 pools, 64 * (8/4) = 128 RNN features
    x = jax.random.normal(xkey, (2, 3, 8, 16), jnp.float32)      # NCHW like PyTorch

    out = jax.block_until_ready(crnn_forward(x, kparams, num_classes))
    ref = crnn_forward_ref(x, rparams)

    assert out.shape == (2, 4, num_classes), out.shape
    err = float(jnp.max(jnp.abs(out.astype(jnp.float32) - ref)))
    # bf16 MXU operands (f32 accumulation) vs a pure-f32 reference: rounding
    # accumulates through 2 convs + 2 BiLSTMs to O(1e-2); 1e-1 still catches any
    # semantic error (gate order / im2col layout / pooling) by a wide margin.
    if not (bool(jnp.isfinite(out).all()) and err < 1e-1):
        raise AssertionError(f"kernel/reference mismatch, max abs err = {err}")
    print("KERNEL_OK")
</pallas_src>

<mosaic_0001>
module attributes {stable_mosaic.version = 11 : i64} {
  func.func @conv_bn_relu_pool_kernel(%arg0: i32, %arg1: memref<1x8x16x3xf32, #tpu.memory_space<vmem>>, %arg2: memref<72x32xbf16, #tpu.memory_space<vmem>>, %arg3: memref<1x32xf32, #tpu.memory_space<vmem>>, %arg4: memref<1x32xf32, #tpu.memory_space<vmem>>, %arg5: memref<1x4x8x32xbf16, #tpu.memory_space<vmem>>, %arg6: memref<10x18x8xf32, #tpu.memory_space<vmem>>, %arg7: memref<128x72xbf16, #tpu.memory_space<vmem>>) attributes {dimension_semantics = [#tpu.dimension_semantics<parallel>], iteration_bounds = array<i64: 2>, scalar_prefetch = 0 : i64, scratch_operands = 2 : i64, tpu.core_type = #tpu.core_type<tc>, window_params = [{transform_indices = @transform_0, window_bounds = array<i64: 1, 8, 16, 3>}, {pipeline_mode = #tpu.pipeline_mode<synchronous>, transform_indices = @transform_1, window_bounds = array<i64: 72, 32>}, {pipeline_mode = #tpu.pipeline_mode<synchronous>, transform_indices = @transform_2, window_bounds = array<i64: 1, 32>}, {pipeline_mode = #tpu.pipeline_mode<synchronous>, transform_indices = @transform_3, window_bounds = array<i64: 1, 32>}, {transform_indices = @transform_4, window_bounds = array<i64: 1, 4, 8, 32>}]} {
    %cst = arith.constant 0.000000e+00 : f32
    %0 = vector.broadcast %cst : f32 to vector<10x18x8xf32>
    %c0 = arith.constant 0 : index
    %c0_0 = arith.constant 0 : index
    %c0_1 = arith.constant 0 : index
    %1 = vector.load %arg6[%c0, %c0_0, %c0_1] : memref<10x18x8xf32, #tpu.memory_space<vmem>>, vector<10x18x8xf32>
    tpu.vector_store %arg6[%c0, %c0_0, %c0_1], %0 {strides = array<i32>} : memref<10x18x8xf32, #tpu.memory_space<vmem>>, vector<10x18x8xf32>,
    %c0_2 = arith.constant 0 : index
    %c0_3 = arith.constant 0 : index
    %c0_4 = arith.constant 0 : index
    %c0_5 = arith.constant 0 : index
    %2 = vector.load %arg1[%c0_2, %c0_3, %c0_4, %c0_5] : memref<1x8x16x3xf32, #tpu.memory_space<vmem>>, vector<1x8x16x3xf32>
    %3 = vector.shape_cast %2 : vector<1x8x16x3xf32> to vector<8x16x3xf32>
    %c1 = arith.constant 1 : index
    %c1_6 = arith.constant 1 : index
    %c0_7 = arith.constant 0 : index
    %4 = vector.load %arg6[%c1, %c1_6, %c0_7] : memref<10x18x8xf32, #tpu.memory_space<vmem>>, vector<8x16x3xf32>
    tpu.vector_store %arg6[%c1, %c1_6, %c0_7], %3 {strides = array<i32>} : memref<10x18x8xf32, #tpu.memory_space<vmem>>, vector<8x16x3xf32>,
    %c0_8 = arith.constant 0 : index
    %c0_9 = arith.constant 0 : index
    %c0_10 = arith.constant 0 : index
    %5 = vector.load %arg6[%c0_8, %c0_9, %c0_10] : memref<10x18x8xf32, #tpu.memory_space<vmem>>, vector<8x16x8xf32>
    %6 = vector.shape_cast %5 : vector<8x16x8xf32> to vector<128x8xf32>
    %7 = arith.truncf %6 : vector<128x8xf32> to vector<128x8xbf16>
    %c0_11 = arith.constant 0 : index
    %c0_12 = arith.constant 0 : index
    %8 = vector.load %arg7[%c0_11, %c0_12] : memref<128x72xbf16, #tpu.memory_space<vmem>>, vector<128x8xbf16>
    tpu.vector_store %arg7[%c0_11, %c0_12], %7 {strides = array<i32>} : memref<128x72xbf16, #tpu.memory_space<vmem>>, vector<128x8xbf16>,
    %c0_13 = arith.constant 0 : index
    %c1_14 = arith.constant 1 : index
    %c0_15 = arith.constant 0 : index
    %9 = vector.load %arg6[%c0_13, %c1_14, %c0_15] : memref<10x18x8xf32, #tpu.memory_space<vmem>>, vector<8x16x8xf32>
    %10 = vector.shape_cast %9 : vector<8x16x8xf32> to vector<128x8xf32>
    %11 = arith.truncf %10 : vector<128x8xf32> to vector<128x8xbf16>
    %c0_16 = arith.constant 0 : index
    %c8 = arith.constant 8 : index
    %12 = vector.load %arg7[%c0_16, %c8] : memref<128x72xbf16, #tpu.memory_space<vmem>>, vector<128x8xbf16>
    tpu.vector_store %arg7[%c0_16, %c8], %11 {strides = array<i32>} : memref<128x72xbf16, #tpu.memory_space<vmem>>, vector<128x8xbf16>,
    %c0_17 = arith.constant 0 : index
    %c2 = arith.constant 2 : index
    %c0_18 = arith.constant 0 : index
    %13 = vector.load %arg6[%c0_17, %c2, %c0_18] : memref<10x18x8xf32, #tpu.memory_space<vmem>>, vector<8x16x8xf32>
    %14 = vector.shape_cast %13 : vector<8x16x8xf32> to vector<128x8xf32>
    %15 = arith.truncf %14 : vector<128x8xf32> to vector<128x8xbf16>
    %c0_19 = arith.constant 0 : index
    %c16 = arith.constant 16 : index
    %16 = vector.load %arg7[%c0_19, %c16] : memref<128x72xbf16, #tpu.memory_space<vmem>>, vector<128x8xbf16>
    tpu.vector_store %arg7[%c0_19, %c16], %15 {strides = array<i32>} : memref<128x72xbf16, #tpu.memory_space<vmem>>, vector<128x8xbf16>,
    %c1_20 = arith.constant 1 : index
    %c0_21 = arith.constant 0 : index
    %c0_22 = arith.constant 0 : index
    %17 = vector.load %arg6[%c1_20, %c0_21, %c0_22] : memref<10x18x8xf32, #tpu.memory_space<vmem>>, vector<8x16x8xf32>
    %18 = vector.shape_cast %17 : vector<8x16x8xf32> to vector<128x8xf32>
    %19 = arith.truncf %18 : vector<128x8xf32> to vector<128x8xbf16>
    %c0_23 = arith.constant 0 : index
    %c24 = arith.constant 24 : index
    %20 = vector.load %arg7[%c0_23, %c24] : memref<128x72xbf16, #tpu.memory_space<vmem>>, vector<128x8xbf16>
    tpu.vector_store %arg7[%c0_23, %c24], %19 {strides = array<i32>} : memref<128x72xbf16, #tpu.memory_space<vmem>>, vector<128x8xbf16>,
    %c1_24 = arith.constant 1 : index
    %c1_25 = arith.constant 1 : index
    %c0_26 = arith.constant 0 : index
    %21 = vector.load %arg6[%c1_24, %c1_25, %c0_26] : memref<10x18x8xf32, #tpu.memory_space<vmem>>, vector<8x16x8xf32>
    %22 = vector.shape_cast %21 : vector<8x16x8xf32> to vector<128x8xf32>
    %23 = arith.truncf %22 : vector<128x8xf32> to vector<128x8xbf16>
    %c0_27 = arith.constant 0 : index
    %c32 = arith.constant 32 : index
    %24 = vector.load %arg7[%c0_27, %c32] : memref<128x72xbf16, #tpu.memory_space<vmem>>, vector<128x8xbf16>
    tpu.vector_store %arg7[%c0_27, %c32], %23 {strides = array<i32>} : memref<128x72xbf16, #tpu.memory_space<vmem>>, vector<128x8xbf16>,
    %c1_28 = arith.constant 1 : index
    %c2_29 = arith.constant 2 : index
    %c0_30 = arith.constant 0 : index
    %25 = vector.load %arg6[%c1_28, %c2_29, %c0_30] : memref<10x18x8xf32, #tpu.memory_space<vmem>>, vector<8x16x8xf32>
    %26 = vector.shape_cast %25 : vector<8x16x8xf32> to vector<128x8xf32>
    %27 = arith.truncf %26 : vector<128x8xf32> to vector<128x8xbf16>
    %c0_31 = arith.constant 0 : index
    %c40 = arith.constant 40 : index
    %28 = vector.load %arg7[%c0_31, %c40] : memref<128x72xbf16, #tpu.memory_space<vmem>>, vector<128x8xbf16>
    tpu.vector_store %arg7[%c0_31, %c40], %27 {strides = array<i32>} : memref<128x72xbf16, #tpu.memory_space<vmem>>, vector<128x8xbf16>,
    %c2_32 = arith.constant 2 : index
    %c0_33 = arith.constant 0 : index
    %c0_34 = arith.constant 0 : index
    %29 = vector.load %arg6[%c2_32, %c0_33, %c0_34] : memref<10x18x8xf32, #tpu.memory_space<vmem>>, vector<8x16x8xf32>
    %30 = vector.shape_cast %29 : vector<8x16x8xf32> to vector<128x8xf32>
    %31 = arith.truncf %30 : vector<128x8xf32> to vector<128x8xbf16>
    %c0_35 = arith.constant 0 : index
    %c48 = arith.constant 48 : index
    %32 = vector.load %arg7[%c0_35, %c48] : memref<128x72xbf16, #tpu.memory_space<vmem>>, vector<128x8xbf16>
    tpu.vector_store %arg7[%c0_35, %c48], %31 {strides = array<i32>} : memref<128x72xbf16, #tpu.memory_space<vmem>>, vector<128x8xbf16>,
    %c2_36 = arith.constant 2 : index
    %c1_37 = arith.constant 1 : index
    %c0_38 = arith.constant 0 : index
    %33 = vector.load %arg6[%c2_36, %c1_37, %c0_38] : memref<10x18x8xf32, #tpu.memory_space<vmem>>, vector<8x16x8xf32>
    %34 = vector.shape_cast %33 : vector<8x16x8xf32> to vector<128x8xf32>
    %35 = arith.truncf %34 : vector<128x8xf32> to vector<128x8xbf16>
    %c0_39 = arith.constant 0 : index
    %c56 = arith.constant 56 : index
    %36 = vector.load %arg7[%c0_39, %c56] : memref<128x72xbf16, #tpu.memory_space<vmem>>, vector<128x8xbf16>
    tpu.vector_store %arg7[%c0_39, %c56], %35 {strides = array<i32>} : memref<128x72xbf16, #tpu.memory_space<vmem>>, vector<128x8xbf16>,
    %c2_40 = arith.constant 2 : index
    %c2_41 = arith.constant 2 : index
    %c0_42 = arith.constant 0 : index
    %37 = vector.load %arg6[%c2_40, %c2_41, %c0_42] : memref<10x18x8xf32, #tpu.memory_space<vmem>>, vector<8x16x8xf32>
    %38 = vector.shape_cast %37 : vector<8x16x8xf32> to vector<128x8xf32>
    %39 = arith.truncf %38 : vector<128x8xf32> to vector<128x8xbf16>
    %c0_43 = arith.constant 0 : index
    %c64 = arith.constant 64 : index
    %40 = vector.load %arg7[%c0_43, %c64] : memref<128x72xbf16, #tpu.memory_space<vmem>>, vector<128x8xbf16>
    tpu.vector_store %arg7[%c0_43, %c64], %39 {strides = array<i32>} : memref<128x72xbf16, #tpu.memory_space<vmem>>, vector<128x8xbf16>,
    %c0_44 = arith.constant 0 : index
    %c0_45 = arith.constant 0 : index
    %41 = vector.load %arg7[%c0_44, %c0_45] : memref<128x72xbf16, #tpu.memory_space<vmem>>, vector<128x72xbf16>
    %c0_46 = arith.constant 0 : index
    %c0_47 = arith.constant 0 : index
    %42 = vector.load %arg2[%c0_46, %c0_47] : memref<72x32xbf16, #tpu.memory_space<vmem>>, vector<72x32xbf16>
    %cst_48 = arith.constant dense<0.000000e+00> : vector<128x32xf32>
    %43 = tpu.matmul %41, %42, %cst_48 {dimension_numbers = #tpu.dot_dimension_numbers<[1], [0], [0], [1], [0, 0, 1, 1], [], []>} : vector<128x72xbf16>, vector<72x32xbf16>, vector<128x32xf32> -> vector<128x32xf32>
    %c0_49 = arith.constant 0 : index
    %c0_50 = arith.constant 0 : index
    %44 = vector.load %arg3[%c0_49, %c0_50] : memref<1x32xf32, #tpu.memory_space<vmem>>, vector<1x32xf32>
    %45 = vector.broadcast %44 : vector<1x32xf32> to vector<128x32xf32>
    %46 = arith.mulf %43, %45 : vector<128x32xf32>
    %c0_51 = arith.constant 0 : index
    %c0_52 = arith.constant 0 : index
    %47 = vector.load %arg4[%c0_51, %c0_52] : memref<1x32xf32, #tpu.memory_space<vmem>>, vector<1x32xf32>
    %48 = vector.broadcast %47 : vector<1x32xf32> to vector<128x32xf32>
    %49 = arith.addf %46, %48 : vector<128x32xf32>
    %cst_53 = arith.constant 0.000000e+00 : f32
    %50 = vector.broadcast %cst_53 : f32 to vector<128x32xf32>
    %51 = arith.maximumf %49, %50 : vector<128x32xf32>
    %52 = vector.shape_cast %51 : vector<128x32xf32> to vector<4x2x16x32xf32>
    %53 = vector.extract_strided_slice %52 {offsets = [0, 0, 0, 0], sizes = [4, 1, 16, 32], strides = [1, 1, 1, 1]} : vector<4x2x16x32xf32> to vector<4x1x16x32xf32>
    %54 = vector.shape_cast %53 : vector<4x1x16x32xf32> to vector<4x16x32xf32>
    %55 = vector.extract_strided_slice %52 {offsets = [0, 1, 0, 0], sizes = [4, 1, 16, 32], strides = [1, 1, 1, 1]} : vector<4x2x16x32xf32> to vector<4x1x16x32xf32>
    %56 = vector.shape_cast %55 : vector<4x1x16x32xf32> to vector<4x16x32xf32>
    %57 = arith.maximumf %54, %56 : vector<4x16x32xf32>
    %58 = vector.shape_cast %57 : vector<4x16x32xf32> to vector<4x8x2x32xf32>
    %59 = vector.extract_strided_slice %58 {offsets = [0, 0, 0, 0], sizes = [4, 8, 1, 32], strides = [1, 1, 1, 1]} : vector<4x8x2x32xf32> to vector<4x8x1x32xf32>
    %60 = vector.shape_cast %59 : vector<4x8x1x32xf32> to vector<4x8x32xf32>
    %61 = vector.extract_strided_slice %58 {offsets = [0, 0, 1, 0], sizes = [4, 8, 1, 32], strides = [1, 1, 1, 1]} : vector<4x8x2x32xf32> to vector<4x8x1x32xf32>
    %62 = vector.shape_cast %61 : vector<4x8x1x32xf32> to vector<4x8x32xf32>
    %63 = arith.maximumf %60, %62 : vector<4x8x32xf32>
    %64 = arith.truncf %63 : vector<4x8x32xf32> to vector<4x8x32xbf16>
    %c0_54 = arith.constant 0 : index
    %c0_55 = arith.constant 0 : index
    %c0_56 = arith.constant 0 : index
    %c0_57 = arith.constant 0 : index
    %65 = vector.load %arg5[%c0_54, %c0_55, %c0_56, %c0_57] : memref<1x4x8x32xbf16, #tpu.memory_space<vmem>>, vector<1x4x8x32xbf16>
    %66 = vector.shape_cast %65 : vector<1x4x8x32xbf16> to vector<4x8x32xbf16>
    %67 = vector.shape_cast %64 : vector<4x8x32xbf16> to vector<1x4x8x32xbf16>
    tpu.vector_store %arg5[%c0_54, %c0_55, %c0_56, %c0_57], %67 {strides = array<i32>} : memref<1x4x8x32xbf16, #tpu.memory_space<vmem>>, vector<1x4x8x32xbf16>,
    return
  }
  func.func @transform_0(%arg0: i32) -> (i32, i32, i32, i32) {
    %c0_i32 = arith.constant 0 : i32
    %c0_i32_0 = arith.constant 0 : i32
    %c0_i32_1 = arith.constant 0 : i32
    %c0_i32_2 = arith.constant 0 : i32
    return %arg0, %c0_i32, %c0_i32_0, %c0_i32_1 : i32, i32, i32, i32
  }
  func.func @transform_1(%arg0: i32) -> (i32, i32) {
    %c0_i32 = arith.constant 0 : i32
    %c0_i32_0 = arith.constant 0 : i32
    %c0_i32_1 = arith.constant 0 : i32
    return %c0_i32, %c0_i32_0 : i32, i32
  }
  func.func @transform_2(%arg0: i32) -> (i32, i32) {
    %c0_i32 = arith.constant 0 : i32
    %c0_i32_0 = arith.constant 0 : i32
    %c0_i32_1 = arith.constant 0 : i32
    return %c0_i32, %c0_i32_0 : i32, i32
  }
  func.func @transform_3(%arg0: i32) -> (i32, i32) {
    %c0_i32 = arith.constant 0 : i32
    %c0_i32_0 = arith.constant 0 : i32
    %c0_i32_1 = arith.constant 0 : i32
    return %c0_i32, %c0_i32_0 : i32, i32
  }
  func.func @transform_4(%arg0: i32) -> (i32, i32, i32, i32) {
    %c0_i32 = arith.constant 0 : i32
    %c0_i32_0 = arith.constant 0 : i32
    %c0_i32_1 = arith.constant 0 : i32
    %c0_i32_2 = arith.constant 0 : i32
    return %arg0, %c0_i32, %c0_i32_0, %c0_i32_1 : i32, i32, i32, i32
  }
}

</mosaic_0001>

<bundles_post_ra>
// kernel: tpu_custom_call.1
= control target key start
LH: loop header
LB: loop body
LE: loop exit
PB: predicated region body
PF: predicated region fallthrough
CT: control target
= control target key end

     0   :  { %9 = vsyncpa [#allocation5], 0  ;;  %s2511_s0 = inlined_call_operand.vmem [shape: f32[2,8,16,3], index: 0, kind: input, shape index: {}]   ;;  %s2512_s1 = inlined_call_operand.vmem [shape: bf16[72,32], index: 1, kind: input, shape index: {}]   ;;  %s2513_s2 = inlined_call_operand.vmem [shape: f32[1,32], index: 2, kind: input, shape index: {}]   ;;  %s2514_s3 = inlined_call_operand.vmem [shape: f32[1,32], index: 3, kind: input, shape index: {}]   ;;  %s2515_s4 = inlined_call_operand.hbm [shape: bf16[2,4,8,32], index: 4, kind: output, shape index: {}]  }
   0x1   :  { %11 = vsyncpa [#allocation5 + $0x1], 0  ;;  %s2004_s15 = smov 0   ;;  %s2006_s16 = smov 0  }
   0x2   :  { %s2008_s17 = smov 0   ;;  %s2010_s18 = smov 0  }
   0x3 LB: > { %s2025_s19 = sadd.s32 4294967295, %s1965_s18   ;;  %s1672_s20 = sadd.s32 4294967294, %s1965_s18   ;;  %s1965_s18 = sphi %s2010_s18, %s2521_s18   ;;  %s1961_s17 = sphi %s2008_s17, %s2520_s17   ;;  %s1957_s16 = sphi %s2006_s16, %s2519_s16   ;;  %s1953_s15 = sphi %s2004_s15, %s2518_s15  }
   0x4   : > { %s2029_s21 = sadd.s32 1, %s1965_s18   ;;  %s113_s22 = sadd.s32 1, %s1961_s17 }
   0x5   : > { %s110_s23 = ssub.s32 %s1965_s18, %s2029_s21  ;;  %p123_p0 = scmp.ne.s32.totalorder %s1961_s17, %s1957_s16 }
   0x6   : > { %p111_p1 = scmp.eq.s32.totalorder %s110_s23, 0  ;;  %p124_p2 = scmp.eq.s32.totalorder %s2025_s19, 1 }
   0x7   : > { %p129_p3 = scmp.ne.s32.totalorder %s1957_s16, %s1953_s15  ;;  %p130_p4 = scmp.eq.s32.totalorder %s1672_s20, 1 }
   0x8   : > { %s2040_s24 = scalar_select %p111_p1, %s1961_s17, %s113_s22  }
   0x9   : > { %p2042_p5 = por %p124_p2, %p123_p0  ;;  %p2046_p6 = por %p130_p4, %p129_p3 }
   0xa   : > { %p1675_p7 = scmp.ge.s32.totalorder %s1965_s18, 1  ;;  %p165_p8 = scmp.lt.s32.totalorder %s1965_s18, 3 }
   0xc   : > { %p166_p9 = pnand %p1675_p7, %p165_p8 }
   0xd   : > { %vm197_vm0 = vcmask (!%p166_p9), 64512   ;;  %vm200_vm1 = vcmask (!%p166_p9), 58368   ;;  %v1967_v0 = vmov (!%p166_p9), 0.0   ;;  %p191_p10 = scmp.lt.s32.totalorder (!%p166_p9), %s2025_s19, 1  ;;  %vm246_vm2 = vcmask (!%p166_p9), 23552   ;;  %s1968_s6 = smov (!%p166_p9), 8  }
   0xe   : > { %169 = sbr.rel (%p166_p9) target bundleno = 556 (0x22c), region = 36  ;;  %198 = vst.msk [vmem:[#allocation2] sm:$0xff] (!%p166_p9), %vm197_vm0, %v1967_v0  ;;  %199 = vst.msk [vmem:[#allocation2 + $0x8] sm:$0xff] (!%p166_p9), %vm197_vm0, %v1967_v0  ;;  %s1969_s7 = smov (!%p166_p9), 16   ;;  %vm885_vm3 = vcmask (!%p166_p9), 1043456   ;;  %vm351_vm4 = vcmask (!%p166_p9), 130112  }
   0xf   : > { %201 = vst.msk [vmem:[#allocation2 + $0x10] sm:$0x3] (!%p166_p9), %vm200_vm1, %v1967_v0  ;;  %204 = vst.msk [vmem:[#allocation2 + $0x28] sm:$0x3] (!%p166_p9), %vm200_vm1, %v1967_v0  ;;  %s1970_s8 = smov (!%p166_p9), 24   ;;  %s1971_s9 = smov (!%p166_p9), 32  }
  0x10   : > { %202 = vst.msk [vmem:[#allocation2 + $0x18] sm:$0xff] (!%p166_p9), %vm197_vm0, %v1967_v0  ;;  %203 = vst.msk [vmem:[#allocation2 + $0x20] sm:$0xff] (!%p166_p9), %vm197_vm0, %v1967_v0  ;;  %s1972_s10 = smov (!%p166_p9), 40   ;;  %s1973_s13 = smov (!%p166_p9), 48   ;;  %vm416_vm5 = vcmask (!%p166_p9), 195712   ;;  %vm481_vm6 = vcmask (!%p166_p9), 261312  }
  0x11   : > { %205 = vst.msk [vmem:[#allocation2 + $0x30] sm:$0xff] (!%p166_p9), %vm197_vm0, %v1967_v0  ;;  %206 = vst.msk [vmem:[#allocation2 + $0x38] sm:$0xff] (!%p166_p9), %vm197_vm0, %v1967_v0  ;;  %s1975_s11 = smov (!%p166_p9), 64   ;;  %vm546_vm7 = vcmask (!%p166_p9), 326912   ;;  %vm611_vm8 = vcmask (!%p166_p9), 392512   ;;  %vm677_vm9 = vcmask (!%p166_p9), 458112  }
  0x12   : > { %207 = vst.msk [vmem:[#allocation2 + $0x40] sm:$0x3] (!%p166_p9), %vm200_vm1, %v1967_v0  ;;  %210 = vst.msk [vmem:[#allocation2 + $0x58] sm:$0x3] (!%p166_p9), %vm200_vm1, %v1967_v0  ;;  %vm742_vm10 = vcmask (!%p166_p9), 523712   ;;  %vm807_vm11 = vcmask (!%p166_p9), 589312  }
  0x13   : > { %208 = vst.msk [vmem:[#allocation2 + $0x48] sm:$0xff] (!%p166_p9), %vm197_vm0, %v1967_v0  ;;  %209 = vst.msk [vmem:[#allocation2 + $0x50] sm:$0xff] (!%p166_p9), %vm197_vm0, %v1967_v0  ;;  %vm860_vm12 = vcmask (!%p166_p9), 588800   ;;  %vm1521_vm13 = vcmask (!%p166_p9), 1041409   ;;  %vm1524_vm14 = vcmask (!%p166_p9), 1042434   ;;  %vm1527_vm15 = vcmask (!%p166_p9), 1043459  }
  0x14   : > { %211 = vst.msk [vmem:[#allocation2 + $0x60] sm:$0xff] (!%p166_p9), %vm197_vm0, %v1967_v0  ;;  %212 = vst.msk [vmem:[#allocation2 + $0x68] sm:$0xff] (!%p166_p9), %vm197_vm0, %v1967_v0  ;;  %s1796_s14 = sshll.u32 (!%p166_p9), %s2025_s19, 8  ;;  %s1977_s29 = smov (!%p166_p9), [#allocation4]  }
  0x15   : > { %213 = vst.msk [vmem:[#allocation2 + $0x70] sm:$0x3] %vm200_vm1, %v1967_v0  ;;  %216 = vst.msk [vmem:[#allocation2 + $0x88] sm:$0x3] %vm200_vm1, %v1967_v0  ;;  %s192_s27 = scalar_select %p191_p10, %s2025_s19, 1  ;;  %v295_v4 = vld [vmem:[#allocation2 + $0x1] sm:$0xff] }
  0x16   : > { %214 = vst.msk [vmem:[#allocation2 + $0x78] sm:$0xff] %vm197_vm0, %v1967_v0  ;;  %215 = vst.msk [vmem:[#allocation2 + $0x80] sm:$0xff] %vm197_vm0, %v1967_v0  ;;  %v296_v5 = vld [vmem:[#allocation2 + $0x9] sm:$0xff]  ;;  %v263_v24 = vld [vmem:[#allocation2] sm:$0xff]  ;;  %s1907_s30 = sshll.u32 %s1977_s29, 4  ;;  %s1908_s30 = int_to_ptr.vmem [resolvable:$false] %s1907_s30 }
  0x17   : > { %217 = vst.msk [vmem:[#allocation2 + $0x90] sm:$0xff] %vm197_vm0, %v1967_v0  ;;  %218 = vst.msk [vmem:[#allocation2 + $0x98] sm:$0xff] %vm197_vm0, %v1967_v0  ;;  %s1763_s28 = sshll.u32 %s192_s27, 7  ;;  %v360_v6 = vld [vmem:[#allocation2 + $0x2] sm:$0xff]  ;;  %v311_v7 = vpack.c.bf16 %v296_v5, %v295_v4  ;;  %v361_v8 = vld [vmem:[#allocation2 + $0xa] sm:$0xff]  ;;  %s1974_s27 = smov 56  }
  0x18   : > { %219 = vst.msk [vmem:[#allocation2 + $0xa0] sm:$0x3] %vm200_vm1, %v1967_v0  ;;  %222 = vst.msk [vmem:[#allocation2 + $0xb8] sm:$0x3] %vm200_vm1, %v1967_v0  ;;  %s2087_s5 = scalar_lea.vmem %s2511_s0, %s1763_s28  ;;  %v376_v14 = vpack.c.bf16 %v361_v8, %v360_v6  ;;  %v264_v23 = vld [vmem:[#allocation2 + $0x8] sm:$0xff] }
  0x19   : > { %220 = vst.msk [vmem:[#allocation2 + $0xa8] sm:$0xff] %vm197_vm0, %v1967_v0  ;;  %221 = vst.msk [vmem:[#allocation2 + $0xb0] sm:$0xff] %vm197_vm0, %v1967_v0  ;;  %v229_v1 = vld [vmem:[%s2087_s5] sm:$0xff]  ;;  %v230_v2 = vld [vmem:[%s2087_s5 + $0x8] sm:$0xff]  ;;  %327 = vrot.lane.b32.xlu0 %v311_v7, %s1968_s6  ;;  %v279_v28 = vpack.c.bf16 %v264_v23, %v263_v24 }
  0x1a   : > { %223 = vst.msk [vmem:[#allocation2 + $0xc0] sm:$0xff] %vm197_vm0, %v1967_v0  ;;  %224 = vst.msk [vmem:[#allocation2 + $0xc8] sm:$0xff] %vm197_vm0, %v1967_v0  ;;  %v235_v3 = vld [vmem:[%s2087_s5 + $0x30] sm:$0xff]  ;;  %v236_v9 = vld [vmem:[%s2087_s5 + $0x38] sm:$0xff] }
  0x1b   : > { %225 = vst.msk [vmem:[#allocation2 + $0xd0] sm:$0x3] %vm200_vm1, %v1967_v0  ;;  %228 = vst.msk [vmem:[#allocation2 + $0xe8] sm:$0x3] %vm200_vm1, %v1967_v0  ;;  %v237_v10 = vld [vmem:[%s2087_s5 + $0x40] sm:$0xff]  ;;  %v238_v11 = vld [vmem:[%s2087_s5 + $0x48] sm:$0xff] }
  0x1c   : > { %226 = vst.msk [vmem:[#allocation2 + $0xd8] sm:$0xff] %vm197_vm0, %v1967_v0  ;;  %227 = vst.msk [vmem:[#allocation2 + $0xe0] sm:$0xff] %vm197_vm0, %v1967_v0  ;;  %v231_v12 = vld [vmem:[%s2087_s5 + $0x10] sm:$0xff]  ;;  %v232_v13 = vld [vmem:[%s2087_s5 + $0x18] sm:$0xff]  ;;  %vm1533_vm1 = vcmask 1045509  }
  0x1d   : > { %247 = vst.msk [vmem:[#allocation2 + $0x19] sm:$0xff] %vm246_vm2, %v229_v1  ;;  %248 = vst.msk [vmem:[#allocation2 + $0x21] sm:$0xff] %vm246_vm2, %v230_v2  ;;  %v239_v15 = vld [vmem:[%s2087_s5 + $0x50] sm:$0xff]  ;;  %v240_v16 = vld [vmem:[%s2087_s5 + $0x58] sm:$0xff]  ;;  %392 = vrot.lane.b32.xlu0 %v376_v14, %s1969_s7 }
  0x1e   : > { %253 = vst.msk [vmem:[#allocation2 + $0x61] sm:$0xff] %vm246_vm2, %v235_v3  ;;  %254 = vst.msk [vmem:[#allocation2 + $0x69] sm:$0xff] %vm246_vm2, %v236_v9  ;;  %v233_v17 = vld [vmem:[%s2087_s5 + $0x20] sm:$0xff]  ;;  %v234_v18 = vld [vmem:[%s2087_s5 + $0x28] sm:$0xff] }
  0x1f   : > { %255 = vst.msk [vmem:[#allocation2 + $0x79] sm:$0xff] %vm246_vm2, %v237_v10  ;;  %256 = vst.msk [vmem:[#allocation2 + $0x81] sm:$0xff] %vm246_vm2, %v238_v11  ;;  %v241_v19 = vld [vmem:[%s2087_s5 + $0x60] sm:$0xff]  ;;  %v242_v20 = vld [vmem:[%s2087_s5 + $0x68] sm:$0xff] }
  0x20   : > { %249 = vst.msk [vmem:[#allocation2 + $0x31] sm:$0xff] %vm246_vm2, %v231_v12  ;;  %250 = vst.msk [vmem:[#allocation2 + $0x39] sm:$0xff] %vm246_vm2, %v232_v13  ;;  %v243_v21 = vld [vmem:[%s2087_s5 + $0x70] sm:$0xff]  ;;  %v244_v22 = vld [vmem:[%s2087_s5 + $0x78] sm:$0xff]  ;;  %s1909_s5 = scalar_lea.vmem %s1908_s30, 512 }
  0x21   : > { %257 = vst.msk [vmem:[#allocation2 + $0x91] sm:$0xff] %vm246_vm2, %v239_v15  ;;  %258 = vst.msk [vmem:[#allocation2 + $0x99] sm:$0xff] %vm246_vm2, %v240_v16  ;;  %v1898_v12 = vld [vmem:[%s2512_s1] sm:$0xff]   ;;  %v1899_v14 = vld [vmem:[%s2512_s1 + $0x8] sm:$0xff]  }
  0x22   : > { %251 = vst.msk [vmem:[#allocation2 + $0x49] sm:$0xff] %vm246_vm2, %v233_v17  ;;  %252 = vst.msk [vmem:[#allocation2 + $0x51] sm:$0xff] %vm246_vm2, %v234_v18  ;;  %1810 = vmatprep.subr.bf16.mxu0 %v1898_v12  ;;  %1836 = vmatprep.subr.bf16.mxu1 %v1898_v12  ;;  %v1900_v17 = vld [vmem:[%s2512_s1 + $0x10] sm:$0xff]  }
  0x23   : > { %259 = vst.msk [vmem:[#allocation2 + $0xa9] sm:$0xff] %vm246_vm2, %v241_v19  ;;  %260 = vst.msk [vmem:[#allocation2 + $0xb1] sm:$0xff] %vm246_vm2, %v242_v20  ;;  %1811 = vmatpush3.bf16.msra.mxu0 %v1898_v12  ;;  %1841 = vmatpush3.bf16.msra.mxu1 %v1898_v12  ;;  %v1901_v19 = vld [vmem:[%s2512_s1 + $0x18] sm:$0xff]  }
  0x24   : > { %261 = vst.msk [vmem:[#allocation2 + $0xc1] sm:$0xff] %vm246_vm2, %v243_v21  ;;  %262 = vst.msk [vmem:[#allocation2 + $0xc9] sm:$0xff] %vm246_vm2, %v244_v22  ;;  %v297_v25 = vld [vmem:[#allocation2 + $0x19] sm:$0xff]  ;;  %v298_v26 = vld [vmem:[#allocation2 + $0x21] sm:$0xff]  ;;  %1812 = vmatprep.subr.bf16.mxu0 %v1899_v14  ;;  %1837 = vmatprep.subr.bf16.mxu1 %v1899_v14  ;;  %vm1536_vm2 = vcmask 1046534  }
  0x25   : > { %v303_v27 = vld [vmem:[#allocation2 + $0x61] sm:$0xff]  ;;  %v312_v29 = vpack.c.bf16 %v298_v26, %v297_v25  ;;  %v425_v31 = vld [vmem:[#allocation2 + $0x18] sm:$0xff]  ;;  %v304_v32 = vld [vmem:[#allocation2 + $0x69] sm:$0xff]  ;;  %287 = vst.msk [vmem:[#allocation3] sm:$0xff] %vm197_vm0, %v279_v28 }
  0x26   : > { %v362_v30 = vld [vmem:[#allocation2 + $0x1a] sm:$0xff]  ;;  %v363_v34 = vld [vmem:[#allocation2 + $0x22] sm:$0xff]  ;;  %v2125_v35 = vpack.c.bf16 %v304_v32, %v303_v27  ;;  %v369_v40 = vld [vmem:[#allocation2 + $0x6a] sm:$0xff] }
  0x27   : > { %v305_v33 = vld [vmem:[#allocation2 + $0x79] sm:$0xff]  ;;  %329 = vrot.lane.b32.xlu1 %v312_v29, %s1968_s6  ;;  %v306_v36 = vld [vmem:[#allocation2 + $0x81] sm:$0xff]  ;;  %v427_v42 = vld [vmem:[#allocation2 + $0x30] sm:$0xff]  ;;  %v377_v43 = vpack.c.bf16 %v363_v34, %v362_v30  ;;  %1813 = vmatpush3.bf16.msra.mxu0 %v1899_v14 }
  0x28   : > { %v426_v37 = vld [vmem:[#allocation2 + $0x20] sm:$0xff]  ;;  %v2127_v38 = vpack.c.bf16 %v306_v36, %v305_v33  ;;  %335 = vrot.lane.b32.xlu0 %v2125_v35, %s1968_s6  ;;  %v428_v44 = vld [vmem:[#allocation2 + $0x38] sm:$0xff]  ;;  %v435_v49 = vld [vmem:[#allocation2 + $0x90] sm:$0xff]  ;;  %1842 = vmatpush3.bf16.msra.mxu1 %v1899_v14 }
  0x29   : > { %v368_v39 = vld [vmem:[#allocation2 + $0x62] sm:$0xff]  ;;  %v441_v41 = vpack.c.bf16 %v426_v37, %v425_v31  ;;  %v433_v45 = vld [vmem:[#allocation2 + $0x78] sm:$0xff]  ;;  %v442_v47 = vpack.c.bf16 %v428_v44, %v427_v42  ;;  %v624_v56 = vld [vmem:[#allocation2 + $0x50] sm:$0xff]  ;;  %1814 = vmatprep.subr.bf16.mxu0 %v1900_v17  ;;  %1838 = vmatprep.subr.bf16.mxu1 %v1900_v17 }
  0x2a   : > { %v434_v46 = vld [vmem:[#allocation2 + $0x80] sm:$0xff]  ;;  %v436_v50 = vld [vmem:[#allocation2 + $0x98] sm:$0xff]  ;;  %v2136_v51 = vpack.c.bf16 %v369_v40, %v368_v39  ;;  %v623_v55 = vld [vmem:[#allocation2 + $0x48] sm:$0xff] }
  0x2b   : > { %v2131_v48 = vpack.c.bf16 %v434_v46, %v433_v45  ;;  %288 = vst.msk [vmem:[#allocation3 + $0x8] sm:$0xff] %vm197_vm0, %v441_v41  ;;  %337 = vrot.lane.b32.xlu1 %v2127_v38, %s1968_s6  ;;  %v2138_v52 = vpack.c.bf16 %v436_v50, %v435_v49  ;;  %v370_v53 = vld [vmem:[#allocation2 + $0x7a] sm:$0xff]  ;;  %v371_v54 = vld [vmem:[#allocation2 + $0x82] sm:$0xff]  ;;  %289 = vst.msk [vmem:[#allocation3 + $0x10] sm:$0xff] %vm197_vm0, %v442_v47  ;;  %v2146_v57 = vpack.c.bf16 %v624_v56, %v623_v55 }
  0x2c   : > { %394 = vrot.lane.b32.xlu0 %v377_v43, %s1969_s7  ;;  %v631_v58 = vld [vmem:[#allocation2 + $0xa8] sm:$0xff]  ;;  %v632_v59 = vld [vmem:[#allocation2 + $0xb0] sm:$0xff]  ;;  %v2150_v60 = vpack.c.bf16 %v371_v54, %v370_v53  ;;  %v431_v62 = vld [vmem:[#allocation2 + $0x60] sm:$0xff]  ;;  %1815 = vmatpush3.bf16.msra.mxu0 %v1900_v17 }
  0x2d   : > { %292 = vst.msk [vmem:[#allocation3 + $0x28] sm:$0xff] %vm197_vm0, %v2131_v48  ;;  %293 = vst.msk [vmem:[#allocation3 + $0x30] sm:$0xff] %vm197_vm0, %v2138_v52  ;;  %v2152_v61 = vpack.c.bf16 %v632_v59, %v631_v58  ;;  %v432_v63 = vld [vmem:[#allocation2 + $0x68] sm:$0xff]  ;;  %v492_v1 = vld [vmem:[#allocation2 + $0x31] sm:$0xff]  ;;  %1843 = vmatpush3.bf16.msra.mxu1 %v1900_v17  ;;  %1816 = vmatprep.subr.bf16.mxu0 %v1901_v19 }
  0x2e   : > { %290 = vst.msk [vmem:[#allocation3 + $0x18] sm:$0xff] %vm197_vm0, %v2146_v57  ;;  %v2159_v0 = vpack.c.bf16 %v432_v63, %v431_v62  ;;  %v493_v2 = vld [vmem:[#allocation2 + $0x39] sm:$0xff]  ;;  %v500_v4 = vld [vmem:[#allocation2 + $0x91] sm:$0xff]  ;;  %v688_v15 = vld [vmem:[#allocation2 + $0x49] sm:$0xff]  ;;  %1839 = vmatprep.subr.bf16.mxu1 %v1901_v19 }
  0x2f   : > { %400 = vrot.lane.b32.xlu1 %v2136_v51, %s1969_s7  ;;  %294 = vst.msk [vmem:[#allocation3 + $0x38] sm:$0xff] %vm197_vm0, %v2152_v61  ;;  %v2169_v3 = vpack.c.bf16 %v493_v2, %v492_v1  ;;  %v501_v5 = vld [vmem:[#allocation2 + $0x99] sm:$0xff]  ;;  %v689_v16 = vld [vmem:[#allocation2 + $0x51] sm:$0xff]  ;;  %v696_v20 = vld [vmem:[#allocation2 + $0xa9] sm:$0xff] }
  0x30   : > { %457 = vrot.lane.b32.xlu0 %v441_v41, %s1970_s8  ;;  %291 = vst.msk [vmem:[#allocation3 + $0x20] sm:$0xff] %vm197_vm0, %v2159_v0  ;;  %v557_v6 = vld [vmem:[#allocation2 + $0x32] sm:$0xff]  ;;  %v558_v7 = vld [vmem:[#allocation2 + $0x3a] sm:$0xff]  ;;  %v2177_v8 = vpack.c.bf16 %v501_v5, %v500_v4  ;;  %v703_v18 = vpack.c.bf16 %v689_v16, %v688_v15  ;;  %1817 = vmatpush3.bf16.msra.mxu0 %v1901_v19  ;;  %v753_v25 = vld [vmem:[#allocation2 + $0x4a] sm:$0xff]  ;;  %vm1530_vm0 = vcmask 1044484  }
  0x31   : > { %v2180_v9 = vpack.c.bf16 %v558_v7, %v557_v6  ;;  %v565_v10 = vld [vmem:[#allocation2 + $0x92] sm:$0xff]  ;;  %v566_v11 = vld [vmem:[#allocation2 + $0x9a] sm:$0xff]  ;;  %1844 = vmatpush3.bf16.msra.mxu1 %v1901_v19  ;;  %v761_v28 = vld [vmem:[#allocation2 + $0xaa] sm:$0xff] }
  0x32   : > { %v576_v13 = vpack.c.bf16 %v566_v11, %v565_v10  ;;  %v697_v21 = vld [vmem:[#allocation2 + $0xb1] sm:$0xff]  ;;  %v1902_v22 = vld [vmem:[%s2512_s1 + $0x20] ss:$0 sps:$4 sm:$0xff]   ;;  %v440_v32 = vld [vmem:[#allocation2 + $0xc8] sm:$0xff] }
  0x33   : > { %402 = vrot.lane.b32.xlu1 %v2150_v60, %s1969_s7  ;;  %v707_v23 = vpack.c.bf16 %v697_v21, %v696_v20  ;;  %1846 = vmatprep.subr.msk.bf16.mxu0 %vm885_vm3, %v1902_v22  ;;  %v887_v24 = vsel %vm885_vm3, %v1902_v22, 0  ;;  %v754_v26 = vld [vmem:[#allocation2 + $0x52] sm:$0xff]  ;;  %v439_v31 = vld [vmem:[#allocation2 + $0xc0] sm:$0xff]  ;;  %v505_v36 = vld [vmem:[#allocation2 + $0xc9] sm:$0xff] }
  0x34   : > { %459 = vrot.lane.b32.xlu0 %v442_v47, %s1970_s8  ;;  %1847 = vmatprep.subr.msk.bf16.mxu1 %vm885_vm3, %v1902_v22  ;;  %v768_v27 = vpack.c.bf16 %v754_v26, %v753_v25  ;;  %v448_v33 = vpack.c.bf16 %v440_v32, %v439_v31  ;;  %v504_v34 = vld [vmem:[#allocation2 + $0xc1] sm:$0xff]  ;;  %v570_v40 = vld [vmem:[#allocation2 + $0xca] sm:$0xff]  ;;  %v635_v42 = vld [vmem:[#allocation2 + $0xd8] sm:$0xff]  ;;  %vm1539_vm3 = vcmask 1047559  }
  0x35   : > { %1819 = vmatpush3.bf16.msra.mxu0 %v887_v24  ;;  %1845 = vmatpush3.bf16.msra.mxu1 %v887_v24  ;;  %v513_v37 = vpack.c.bf16 %v505_v36, %v504_v34  ;;  %v569_v39 = vld [vmem:[#allocation2 + $0xc2] sm:$0xff]  ;;  %v700_v46 = vld [vmem:[#allocation2 + $0xd9] sm:$0xff] }
  0x36   : > { %v578_v41 = vpack.c.bf16 %v570_v40, %v569_v39  ;;  %v766_v53 = vld [vmem:[#allocation2 + $0xe2] sm:$0xff] }
  0x37   : > { %465 = vrot.lane.b32.xlu1 %v2131_v48, %s1970_s8 }
  0x38   : > { %522 = vrot.lane.b32.xlu0 %v312_v29, %s1971_s9  ;;  %v762_v29 = vld [vmem:[#allocation2 + $0xb2] sm:$0xff] }
  0x39   : > { %v772_v30 = vpack.c.bf16 %v762_v29, %v761_v28 }
  0x3b   : > { %467 = vrot.lane.b32.xlu1 %v2138_v52, %s1970_s8 }
  0x3c   : > { %524 = vrot.lane.b32.xlu0 %v2169_v3, %s1971_s9 }
  0x3f   : > { %530 = vrot.lane.b32.xlu1 %v2127_v38, %s1971_s9 }
  0x40   : > { %587 = vrot.lane.b32.xlu0 %v377_v43, %s1972_s10  ;;  %v636_v43 = vld [vmem:[#allocation2 + $0xe0] sm:$0xff] }
  0x41   : > { %v644_v44 = vpack.c.bf16 %v636_v43, %v635_v42 }
  0x43   : > { %532 = vrot.lane.b32.xlu1 %v2177_v8, %s1971_s9 }
  0x44   : > { %589 = vrot.lane.b32.xlu0 %v2180_v9, %s1972_s10 }
  0x47   : > { %595 = vrot.lane.b32.xlu1 %v2150_v60, %s1972_s10 }
  0x48   : > { %653 = vrot.lane.b32.xlu0 %v442_v47, %s1973_s13  ;;  %v701_v47 = vld [vmem:[#allocation2 + $0xe1] sm:$0xff] }
  0x4b   : > { %597 = vrot.lane.b32.xlu1 %v576_v13, %s1972_s10 }
  0x4c   : > { %655 = vrot.lane.b32.xlu0 %v2146_v57, %s1973_s13 }
  0x4f   : > { %661 = vrot.lane.b32.xlu1 %v2138_v52, %s1973_s13  ;;  %v765_v52 = vld [vmem:[#allocation2 + $0xda] sm:$0xff] }
  0x50   : > { %718 = vrot.lane.b32.xlu0 %v2169_v3, %s1974_s27 }
  0x53   : > { %663 = vrot.lane.b32.xlu1 %v2152_v61, %s1973_s13 }
  0x54   : > { %720 = vrot.lane.b32.xlu0 %v703_v18, %s1974_s27 }
  0x57   : > { %726 = vrot.lane.b32.xlu1 %v2177_v8, %s1974_s27 }
  0x58   : > { %783 = vrot.lane.b32.xlu0 %v2180_v9, %s1975_s11 }
  0x5b   : > { %728 = vrot.lane.b32.xlu1 %v707_v23, %s1974_s27 }
  0x5c   : > { %331 = vrot.lane.b32.xlu0 %v2169_v3, %s1968_s6 }
  0x5f   : > { %791 = vrot.lane.b32.xlu1 %v576_v13, %s1975_s11 }
  0x60   : > { %785 = vrot.lane.b32.xlu0 %v768_v27, %s1975_s11 }
  0x63   : > { %339 = vrot.lane.b32.xlu1 %v2177_v8, %s1968_s6 }
  0x64   : > { %333 = vrot.lane.b32.xlu0 %v703_v18, %s1968_s6 }
  0x67   : > { %793 = vrot.lane.b32.xlu1 %v772_v30, %s1975_s11 }
  0x68   : > { %396 = vrot.lane.b32.xlu0 %v2180_v9, %s1969_s7 }
  0x6b   : > { %341 = vrot.lane.b32.xlu1 %v707_v23, %s1968_s6 }
  0x6c   : > { %398 = vrot.lane.b32.xlu0 %v768_v27, %s1969_s7 }
  0x6f   : > { %404 = vrot.lane.b32.xlu1 %v576_v13, %s1969_s7 }
  0x70   : > { %461 = vrot.lane.b32.xlu0 %v2146_v57, %s1970_s8 }
  0x73   : > { %406 = vrot.lane.b32.xlu1 %v772_v30, %s1969_s7 }
  0x74   : > { %463 = vrot.lane.b32.xlu0 %v2159_v0, %s1970_s8 }
  0x77   : > { %469 = vrot.lane.b32.xlu1 %v2152_v61, %s1970_s8 }
  0x78   : > { %526 = vrot.lane.b32.xlu0 %v703_v18, %s1971_s9 }
  0x7b   : > { %471 = vrot.lane.b32.xlu1 %v448_v33, %s1970_s8 }
  0x7c   : > { %528 = vrot.lane.b32.xlu0 %v2125_v35, %s1971_s9 }
  0x7f   : > { %534 = vrot.lane.b32.xlu1 %v707_v23, %s1971_s9 }
  0x80   : > { %591 = vrot.lane.b32.xlu0 %v768_v27, %s1972_s10 }
  0x83   : > { %536 = vrot.lane.b32.xlu1 %v513_v37, %s1971_s9 }
  0x84   : > { %593 = vrot.lane.b32.xlu0 %v2136_v51, %s1972_s10 }
  0x87   : > { %599 = vrot.lane.b32.xlu1 %v772_v30, %s1972_s10 }
  0x88   : > { %657 = vrot.lane.b32.xlu0 %v2159_v0, %s1973_s13 }
  0x8b   : > { %601 = vrot.lane.b32.xlu1 %v578_v41, %s1972_s10  ;;  %v328_v45 = vpop.permute.xlu0 %327  ;;  %s188_s10 = sand.u32 1, %s1957_s16  }
  0x8c   : > { %659 = vrot.lane.b32.xlu0 %v2131_v48, %s1973_s13  ;;  %352 = vst.msk [vmem:[#allocation3] sm:$0xff] %vm351_vm4, %v328_v45  ;;  %v709_v48 = vpack.c.bf16 %v701_v47, %v700_v46  ;;  %s1676_s12 = sshll.u32 %s188_s10, 4  ;;  %s2468_s19 = scalar_lea.sflag [#allocation5], %s188_s10 }
  0x8f   : > { %665 = vrot.lane.b32.xlu1 %v448_v33, %s1973_s13  ;;  %v393_v49 = vpop.permute.xlu0 %392 }
  0x90   : > { %722 = vrot.lane.b32.xlu0 %v2125_v35, %s1974_s27  ;;  %417 = vst.msk [vmem:[#allocation3] sm:$0xff] %vm416_vm5, %v393_v49 }
  0x93   : > { %667 = vrot.lane.b32.xlu1 %v644_v44, %s1973_s13  ;;  %s2394_s13 = scalar_lea.vmem [#allocation4], %s1676_s12 }
  0x94   : > { %724 = vrot.lane.b32.xlu0 %v2127_v38, %s1974_s27  ;;  %s1610_s20 = sshll.u32 %s2394_s13, 4  ;;  %s2462_s20 = int_to_ptr.vmem [resolvable:$true] %s1610_s20 }
  0x95   : > { %s1903_s28 = scalar_lea.vmem %s2462_s20, 256  ;;  %p1910_p0 = scmp.lt.s32.totalorder %s2462_s20, %s1908_s30 }
  0x96   : > { %p1904_p11 = scmp.ne.s32.totalorder %s2462_s20, %s1903_s28  ;;  %p1911_p1 = scmp.lt.s32.totalorder %s1909_s5, %s1903_s28 }
  0x97   : > { %730 = vrot.lane.b32.xlu1 %v513_v37, %s1974_s27 }
  0x98   : > { %787 = vrot.lane.b32.xlu0 %v2136_v51, %s1975_s11  ;;  %v774_v51 = vpack.c.bf16 %v766_v53, %v765_v52  ;;  %p1905_p12 = pnand %p1904_p11, %p2042_p5  ;;  %p1912_p2 = por %p1911_p1, %p1910_p0 }
  0x99   : > { %v330_v35 = vpop.permute.xlu1 %329 }
  0x9a   : > { %353 = vst.msk [vmem:[#allocation3 + $0x8] sm:$0xff] %vm351_vm4, %v330_v35  ;;  %v336_v50 = vpop.permute.xlu0 %335  ;;  %p1906_p13 = pneg %p1905_p12 }
  0x9b   : > { %732 = vrot.lane.b32.xlu1 %v709_v48, %s1974_s27  ;;  %356 = vst.msk [vmem:[#allocation3 + $0x20] sm:$0xff] %vm351_vm4, %v336_v50  ;;  %s2460_s27 = scalar_lea.hbm %s2515_s4, %s1796_s14 }
  0x9c   : > { %789 = vrot.lane.b32.xlu0 %v2150_v60, %s1975_s11  ;;  %p1913_p3 = pnand %p1912_p2, %p1906_p13 }
  0x9d   : > { %v338_v38 = vpop.permute.xlu1 %337 }
  0x9e   : > { %357 = vst.msk [vmem:[#allocation3 + $0x28] sm:$0xff] %vm351_vm4, %v338_v38  ;;  %v395_v54 = vpop.permute.xlu0 %394 }
  0x9f   : > { %795 = vrot.lane.b32.xlu1 %v578_v41, %s1975_s11  ;;  %418 = vst.msk [vmem:[#allocation3 + $0x8] sm:$0xff] %vm416_vm5, %v395_v54 }
  0xa1   : > { %v401_v55 = vpop.permute.xlu1 %400 }
  0xa2   : > { %421 = vst.msk [vmem:[#allocation3 + $0x20] sm:$0xff] %vm416_vm5, %v401_v55  ;;  %v458_v56 = vpop.permute.xlu0 %457 }
  0xa3   : > { %797 = vrot.lane.b32.xlu1 %v774_v51, %s1975_s11  ;;  %482 = vst.msk [vmem:[#allocation3] sm:$0xff] %vm481_vm6, %v458_v56 }
  0xa5   : > { %v403_v57 = vpop.permute.xlu1 %402 }
  0xa6   : > { %422 = vst.msk [vmem:[#allocation3 + $0x28] sm:$0xff] %vm416_vm5, %v403_v57  ;;  %v460_v58 = vpop.permute.xlu0 %459  ;;  %v2343_v57 = vld [vmem:[%s2513_s2] ss:$0 sm:$0xff] }
  0xa7   : > { %483 = vst.msk [vmem:[#allocation3 + $0x8] sm:$0xff] %vm481_vm6, %v460_v58  ;;  %v1976_v58 = vmov 1983009808  }
  0xa9   : > { %v466_v59 = vpop.permute.xlu1 %465 }
  0xaa   : > { %486 = vst.msk [vmem:[#allocation3 + $0x20] sm:$0xff] %vm481_vm6, %v466_v59  ;;  %v523_v60 = vpop.permute.xlu0 %522  ;;  %v1066_v59 = vunpack.c.l.s4 %v1976_v58 }
  0xab   : > { %547 = vst.msk [vmem:[#allocation3] sm:$0xff] %vm546_vm7, %v523_v60  ;;  %v1068_v60 = vlaneseq }
  0xad   : > { %v468_v61 = vpop.permute.xlu1 %467 }
  0xae   : > { %487 = vst.msk [vmem:[#allocation3 + $0x28] sm:$0xff] %vm481_vm6, %v468_v61  ;;  %v525_v62 = vpop.permute.xlu0 %524 }
  0xaf   : > { %548 = vst.msk [vmem:[#allocation3 + $0x8] sm:$0xff] %vm546_vm7, %v525_v62  ;;  %v2348_v62 = vld [vmem:[%s2514_s3] ss:$0 sm:$0xff] }
  0xb1   : > { %v531_v63 = vpop.permute.xlu1 %530 }
  0xb2   : > { %551 = vst.msk [vmem:[#allocation3 + $0x20] sm:$0xff] %vm546_vm7, %v531_v63  ;;  %v588_v0 = vpop.permute.xlu0 %587 }
  0xb3   : > { %612 = vst.msk [vmem:[#allocation3] sm:$0xff] %vm611_vm8, %v588_v0 }
  0xb5   : > { %v533_v1 = vpop.permute.xlu1 %532 }
  0xb6   : > { %552 = vst.msk [vmem:[#allocation3 + $0x28] sm:$0xff] %vm546_vm7, %v533_v1  ;;  %v590_v2 = vpop.permute.xlu0 %589 }
  0xb7   : > { %613 = vst.msk [vmem:[#allocation3 + $0x8] sm:$0xff] %vm611_vm8, %v590_v2  ;;  %v1067_v2 = vunpack.c.0.s8 %v1066_v59 }
  0xb9   : > { %v596_v3 = vpop.permute.xlu1 %595 }
  0xba   : > { %616 = vst.msk [vmem:[#allocation3 + $0x20] sm:$0xff] %vm611_vm8, %v596_v3  ;;  %v654_v4 = vpop.permute.xlu0 %653  ;;  %v1069_v3 = vshrl.u32 %v1068_v60, 7 }
  0xbb   : > { %678 = vst.msk [vmem:[#allocation3] sm:$0xff] %vm677_vm9, %v654_v4 }
  0xbd   : > { %v598_v5 = vpop.permute.xlu1 %597 }
  0xbe   : > { %617 = vst.msk [vmem:[#allocation3 + $0x28] sm:$0xff] %vm611_vm8, %v598_v5  ;;  %v656_v6 = vpop.permute.xlu0 %655 }
  0xbf   : > { %679 = vst.msk [vmem:[#allocation3 + $0x8] sm:$0xff] %vm677_vm9, %v656_v6 }
  0xc1   : > { %v662_v7 = vpop.permute.xlu1 %661 }
  0xc2   : > { %682 = vst.msk [vmem:[#allocation3 + $0x20] sm:$0xff] %vm677_vm9, %v662_v7  ;;  %v719_v8 = vpop.permute.xlu0 %718 }
  0xc3   : > { %743 = vst.msk [vmem:[#allocation3] sm:$0xff] %vm742_vm10, %v719_v8 }
  0xc5   : > { %v664_v9 = vpop.permute.xlu1 %663 }
  0xc6   : > { %683 = vst.msk [vmem:[#allocation3 + $0x28] sm:$0xff] %vm677_vm9, %v664_v9  ;;  %v721_v10 = vpop.permute.xlu0 %720 }
  0xc7   : > { %744 = vst.msk [vmem:[#allocation3 + $0x8] sm:$0xff] %vm742_vm10, %v721_v10 }
  0xc9   : > { %v727_v11 = vpop.permute.xlu1 %726 }
  0xca   : > { %747 = vst.msk [vmem:[#allocation3 + $0x20] sm:$0xff] %vm742_vm10, %v727_v11  ;;  %v784_v12 = vpop.permute.xlu0 %783 }
  0xcb   : > { %808 = vst.msk [vmem:[#allocation3] sm:$0xff] %vm807_vm11, %v784_v12 }
  0xcd   : > { %v729_v13 = vpop.permute.xlu1 %728 }
  0xce   : > { %748 = vst.msk [vmem:[#allocation3 + $0x28] sm:$0xff] %vm742_vm10, %v729_v13  ;;  %v332_v14 = vpop.permute.xlu0 %331  ;;  %v2357_v13 = vsub.s32 %v1067_v2, %v1069_v3 }
  0xcf   : > { %354 = vst.msk [vmem:[#allocation3 + $0x10] sm:$0xff] %vm351_vm4, %v332_v14 }
  0xd1   : > { %v792_v15 = vpop.permute.xlu1 %791 }
  0xd2   : > { %812 = vst.msk [vmem:[#allocation3 + $0x20] sm:$0xff] %vm807_vm11, %v792_v15  ;;  %v786_v16 = vpop.permute.xlu0 %785  ;;  %v816_v17 = vld [vmem:[#allocation3] sm:$0xff] }
  0xd3   : > { %809 = vst.msk [vmem:[#allocation3 + $0x8] sm:$0xff] %vm807_vm11, %v786_v16  ;;  %1820 = vmatprep.mubr.msk.bf16.mxu0 %vm860_vm12, %v816_v17 }
  0xd5   : > { %v340_v18 = vpop.permute.xlu1 %339 }
  0xd6   : > { %358 = vst.msk [vmem:[#allocation3 + $0x30] sm:$0xff] %vm351_vm4, %v340_v18  ;;  %v334_v19 = vpop.permute.xlu0 %333 }
  0xd7   : > { %355 = vst.msk [vmem:[#allocation3 + $0x18] sm:$0xff] %vm351_vm4, %v334_v19 }
  0xd9   : > { %v794_v20 = vpop.permute.xlu1 %793  ;;  %v820_v21 = vld [vmem:[#allocation3 + $0x20] sm:$0xff] }
  0xda   : > { %813 = vst.msk [vmem:[#allocation3 + $0x28] sm:$0xff] %vm807_vm11, %v794_v20  ;;  %1828 = vmatprep.mubr.msk.bf16.mxu1 %vm860_vm12, %v820_v21  ;;  %v397_v22 = vpop.permute.xlu0 %396  ;;  %v817_v23 = vld [vmem:[#allocation3 + $0x8] sm:$0xff] }
  0xdb   : > { %419 = vst.msk [vmem:[#allocation3 + $0x10] sm:$0xff] %vm416_vm5, %v397_v22  ;;  %1821 = vmatmul.mubr.msk.bf16.vlgmr.msra.gmra.mrb[0].mxu0 %vm860_vm12, %v817_v23 }
  0xdd   : > { %v342_v24 = vpop.permute.xlu1 %341 }
  0xde   : > { %359 = vst.msk [vmem:[#allocation3 + $0x38] sm:$0xff] %vm351_vm4, %v342_v24  ;;  %v399_v25 = vpop.permute.xlu0 %398  ;;  %vm1591_vm4 = vcmask 257024  }
  0xdf   : > { %420 = vst.msk [vmem:[#allocation3 + $0x18] sm:$0xff] %vm416_vm5, %v399_v25 }
  0xe1   : > { %v405_v26 = vpop.permute.xlu1 %404  ;;  %v821_v27 = vld [vmem:[#allocation3 + $0x28] sm:$0xff] }
  0xe2   : > { %423 = vst.msk [vmem:[#allocation3 + $0x30] sm:$0xff] %vm416_vm5, %v405_v26  ;;  %1829 = vmatmul.mubr.msk.bf16.vlgmr.msra.gmra.mrb[0].mxu1 %vm860_vm12, %v821_v27  ;;  %v462_v28 = vpop.permute.xlu0 %461 }
  0xe3   : > { %484 = vst.msk [vmem:[#allocation3 + $0x10] sm:$0xff] %vm481_vm6, %v462_v28 }
  0xe5   : > { %v407_v29 = vpop.permute.xlu1 %406 }
  0xe6   : > { %424 = vst.msk [vmem:[#allocation3 + $0x38] sm:$0xff] %vm416_vm5, %v407_v29  ;;  %v464_v30 = vpop.permute.xlu0 %463 }
  0xe7   : > { %485 = vst.msk [vmem:[#allocation3 + $0x18] sm:$0xff] %vm481_vm6, %v464_v30 }
  0xe9   : > { %v470_v31 = vpop.permute.xlu1 %469 }
  0xea   : > { %488 = vst.msk [vmem:[#allocation3 + $0x30] sm:$0xff] %vm481_vm6, %v470_v31  ;;  %v527_v32 = vpop.permute.xlu0 %526 }
  0xeb   : > { %549 = vst.msk [vmem:[#allocation3 + $0x10] sm:$0xff] %vm546_vm7, %v527_v32 }
  0xed   : > { %v472_v33 = vpop.permute.xlu1 %471 }
  0xee   : > { %489 = vst.msk [vmem:[#allocation3 + $0x38] sm:$0xff] %vm481_vm6, %v472_v33  ;;  %v529_v34 = vpop.permute.xlu0 %528 }
  0xef   : > { %550 = vst.msk [vmem:[#allocation3 + $0x18] sm:$0xff] %vm546_vm7, %v529_v34 }
  0xf1   : > { %v535_v36 = vpop.permute.xlu1 %534 }
  0xf2   : > { %553 = vst.msk [vmem:[#allocation3 + $0x30] sm:$0xff] %vm546_vm7, %v535_v36  ;;  %v592_v37 = vpop.permute.xlu0 %591 }
  0xf3   : > { %614 = vst.msk [vmem:[#allocation3 + $0x10] sm:$0xff] %vm611_vm8, %v592_v37 }
  0xf5   : > { %v537_v39 = vpop.permute.xlu1 %536 }
  0xf6   : > { %554 = vst.msk [vmem:[#allocation3 + $0x38] sm:$0xff] %vm546_vm7, %v537_v39  ;;  %v594_v40 = vpop.permute.xlu0 %593 }
  0xf7   : > { %615 = vst.msk [vmem:[#allocation3 + $0x18] sm:$0xff] %vm611_vm8, %v594_v40 }
  0xf9   : > { %v600_v41 = vpop.permute.xlu1 %599 }
  0xfa   : > { %618 = vst.msk [vmem:[#allocation3 + $0x30] sm:$0xff] %vm611_vm8, %v600_v41  ;;  %v658_v42 = vpop.permute.xlu0 %657 }
  0xfb   : > { %680 = vst.msk [vmem:[#allocation3 + $0x10] sm:$0xff] %vm677_vm9, %v658_v42 }
  0xfd   : > { %v602_v43 = vpop.permute.xlu1 %601 }
  0xfe   : > { %619 = vst.msk [vmem:[#allocation3 + $0x38] sm:$0xff] %vm611_vm8, %v602_v43  ;;  %v660_v44 = vpop.permute.xlu0 %659 }
  0xff   : > { %681 = vst.msk [vmem:[#allocation3 + $0x18] sm:$0xff] %vm677_vm9, %v660_v44 }
 0x101   : > { %v666_v45 = vpop.permute.xlu1 %665 }
 0x102   : > { %684 = vst.msk [vmem:[#allocation3 + $0x30] sm:$0xff] %vm677_vm9, %v666_v45  ;;  %v723_v46 = vpop.permute.xlu0 %722 }
 0x103   : > { %745 = vst.msk [vmem:[#allocation3 + $0x10] sm:$0xff] %vm742_vm10, %v723_v46 }
 0x105   : > { %v668_v47 = vpop.permute.xlu1 %667 }
 0x106   : > { %685 = vst.msk [vmem:[#allocation3 + $0x38] sm:$0xff] %vm677_vm9, %v668_v47  ;;  %v725_v49 = vpop.permute.xlu0 %724 }
 0x107   : > { %746 = vst.msk [vmem:[#allocation3 + $0x18] sm:$0xff] %vm742_vm10, %v725_v49 }
 0x109   : > { %v731_v48 = vpop.permute.xlu1 %730 }
 0x10a   : > { %749 = vst.msk [vmem:[#allocation3 + $0x30] sm:$0xff] %vm742_vm10, %v731_v48  ;;  %v788_v35 = vpop.permute.xlu0 %787 }
 0x10b   : > { %810 = vst.msk [vmem:[#allocation3 + $0x10] sm:$0xff] %vm807_vm11, %v788_v35 }
 0x10d   : > { %v733_v50 = vpop.permute.xlu1 %732 }
 0x10e   : > { %750 = vst.msk [vmem:[#allocation3 + $0x38] sm:$0xff] %vm742_vm10, %v733_v50  ;;  %v790_v52 = vpop.permute.xlu0 %789 }
 0x10f   : > { %811 = vst.msk [vmem:[#allocation3 + $0x18] sm:$0xff] %vm807_vm11, %v790_v52 }
 0x111   : > { %v796_v53 = vpop.permute.xlu1 %795 }
 0x112   : > { %814 = vst.msk [vmem:[#allocation3 + $0x30] sm:$0xff] %vm807_vm11, %v796_v53  ;;  %v818_v38 = vld [vmem:[#allocation3 + $0x10] sm:$0xff] }
 0x113   : > { %1824 = vmatprep.mubr.msk.bf16.mxu0 %vm860_vm12, %v818_v38 }
 0x115   : > { %v798_v54 = vpop.permute.xlu1 %797 }
 0x116   : > { %815 = vst.msk [vmem:[#allocation3 + $0x38] sm:$0xff] %vm807_vm11, %v798_v54  ;;  %v819_v51 = vld [vmem:[#allocation3 + $0x18] sm:$0xff] }
 0x117   : > { %1825 = vmatmul.mubr.msk.bf16.gmra.mrb[4].mxu0 %vm860_vm12, %v819_v51 }
 0x119   : > { %v822_v55 = vld [vmem:[#allocation3 + $0x30] sm:$0xff] }
 0x11a   : > { %1832 = vmatprep.mubr.msk.bf16.mxu1 %vm860_vm12, %v822_v55 }
 0x11d   : > { %v823_v56 = vld [vmem:[#allocation3 + $0x38] sm:$0xff] }
 0x11e   : > { %1833 = vmatmul.mubr.msk.bf16.gmra.mrb[4].mxu1 %vm860_vm12, %v823_v56 }
 0x1ae   : > { %v1822_v61 = vpop.f32.mrb[0].mxu0 }
 0x1af   : > { %v995_v63 = vmul.f32 %v1822_v61, %v2343_v57  ;;  %v923_v0 = vpop.f32.mrb[1].mxu0 }
 0x1b0   : > { %v993_v1 = vmul.f32 %v2343_v57, %v923_v0  ;;  %v1823_v4 = vpop.f32.mrb[2].mxu0 }
 0x1b1   : > { %v1018_v5 = vadd.f32 %v2348_v62, %v995_v63  ;;  %v996_v6 = vmul.f32 %v1823_v4, %v2343_v57  ;;  %v926_v7 = vpop.f32.mrb[3].mxu0 }
 0x1b2   : > { %v1016_v8 = vadd.f32 %v2348_v62, %v993_v1  ;;  %v994_v9 = vmul.f32 %v2343_v57, %v926_v7 }
 0x1b3   : > { %v1034_v10 = vmax.f32 %v1018_v5, 0.0  ;;  %v1019_v11 = vadd.f32 %v2348_v62, %v996_v6 }
 0x1b4   : > { %v1032_v12 = vmax.f32 %v1016_v8, 0.0  ;;  %v1017_v14 = vadd.f32 %v2348_v62, %v994_v9 }
 0x1b5   : > { %v1830_v15 = vpop.f32.mrb[0].mxu1  ;;  %v1035_v16 = vmax.f32 %v1019_v11, 0.0 }
 0x1b6   : > { %v1003_v17 = vmul.f32 %v1830_v15, %v2343_v57  ;;  %v955_v18 = vpop.f32.mrb[1].mxu1  ;;  %v1048_v19 = vmax.f32 %v1032_v12, %v1034_v10  ;;  %v1033_v20 = vmax.f32 %v1017_v14, 0.0 }
 0x1b7   : > { %v1001_v21 = vmul.f32 %v2343_v57, %v955_v18  ;;  %v1831_v22 = vpop.f32.mrb[2].mxu1 }
 0x1b8   : > { %v1026_v23 = vadd.f32 %v2348_v62, %v1003_v17  ;;  %v1004_v24 = vmul.f32 %v1831_v22, %v2343_v57  ;;  %v958_v25 = vpop.f32.mrb[3].mxu1  ;;  %v1064_v26 = vcombine.high %v1048_v19, %v1048_v19  ;;  %v1071_v27 = vrot.slane %v1048_v19, %v2357_v13 }
 0x1b9   : > { %v1049_v28 = vmax.f32 %v1033_v20, %v1035_v16  ;;  %v1024_v29 = vadd.f32 %v2348_v62, %v1001_v21  ;;  %v1002_v32 = vmul.f32 %v2343_v57, %v958_v25 }
 0x1ba   : > { %v1042_v30 = vmax.f32 %v1026_v23, 0.0  ;;  %v2367_v31 = vadd.f32 %v2348_v62, %v1004_v24  ;;  %v1078_v33 = vrot.slane %v1064_v26, %v2357_v13  ;;  %v1079_v34 = vcombine.high %v1071_v27, %v1071_v27 }
 0x1bb   : > { %v1694_v36 = vrot.slane %v1071_v27, 9  ;;  %v1081_v37 = vcombine.high %v1049_v28, %v1049_v28  ;;  %v1088_v39 = vrot.slane %v1049_v28, %v2357_v13  ;;  %v1040_v40 = vmax.f32 %v1024_v29, 0.0 }
 0x1bc   : > { %v1043_v41 = vmax.f32 %v2367_v31, 0.0  ;;  %v2374_v42 = vadd.f32 %v2348_v62, %v1002_v32  ;;  %v1080_v43 = vcombine.high %v1078_v33, %v1078_v33  ;;  %v1695_v44 = vrot.slane %v1079_v34, 9 }
 0x1bd   : > { %v1696_v45 = vrot.slane %v1078_v33, 9  ;;  %v1328_v46 = vmax.f32 %v1071_v27, %v1694_v36  ;;  %v1095_v47 = vrot.slane %v1081_v37, %v2357_v13  ;;  %v1096_v49 = vcombine.high %v1088_v39, %v1088_v39 }
 0x1be   : > { %v1698_v48 = vrot.slane %v1088_v39, 9  ;;  %v1052_v35 = vmax.f32 %v1040_v40, %v1042_v30  ;;  %v1697_v50 = vrot.slane %v1080_v43, 9  ;;  %v1329_v52 = vmax.f32 %v1079_v34, %v1695_v44 }
 0x1bf   : > { %v1330_v53 = vmax.f32 %v1078_v33, %v1696_v45  ;;  %v1764_v38 = vpack.c.bf16 %v1328_v46, %v1328_v46  ;;  %v1097_v54 = vcombine.high %v1095_v47, %v1095_v47  ;;  %v1699_v51 = vrot.slane %v1096_v49, 9 }
 0x1c0   : > { %v1700_v55 = vrot.slane %v1095_v47, 9  ;;  %v1332_v56 = vmax.f32 %v1088_v39, %v1698_v48  ;;  %v1331_v58 = vmax.f32 %v1080_v43, %v1697_v50  ;;  %v1765_v59 = vpack.c.bf16 %v1329_v52, %v1329_v52 }
 0x1c1   : > { %v1766_v60 = vpack.c.bf16 %v1330_v53, %v1330_v53  ;;  %v1488_v61 = vunpack.c.l.b16 %v1764_v38  ;;  %v1701_v63 = vrot.slane %v1097_v54, 9  ;;  %v1333_v0 = vmax.f32 %v1096_v49, %v1699_v51 }
 0x1c2   : > { %v1334_v1 = vmax.f32 %v1095_v47, %v1700_v55  ;;  %v1768_v2 = vpack.c.bf16 %v1332_v56, %v1332_v56  ;;  %v1767_v3 = vpack.c.bf16 %v1331_v58, %v1331_v58  ;;  %v1489_v4 = vunpack.c.l.b16 %v1765_v59 }
 0x1c3   : > { %v1490_v5 = vunpack.c.l.b16 %v1766_v60  ;;  %v1132_v6 = vcombine.high %v1052_v35, %v1052_v35  ;;  %v1335_v7 = vmax.f32 %v1097_v54, %v1701_v63  ;;  %v1769_v8 = vpack.c.bf16 %v1333_v0, %v1333_v0 }
 0x1c4   : > { %v1770_v9 = vpack.c.bf16 %v1334_v1, %v1334_v1  ;;  %v1492_v10 = vunpack.c.l.b16 %v1768_v2  ;;  %v1491_v11 = vunpack.c.l.b16 %v1767_v3  ;;  %v1520_v12 = vrot.slane %v1489_v4, 7 }
 0x1c5   : > { %v1523_v14 = vrot.slane %v1490_v5, 6  ;;  %v1139_v15 = vrot.slane %v1052_v35, %v2357_v13  ;;  %v1771_v16 = vpack.c.bf16 %v1335_v7, %v1335_v7  ;;  %v1493_v17 = vunpack.c.l.b16 %v1769_v8 }
 0x1c6   : > { %v1494_v18 = vunpack.c.l.b16 %v1770_v9  ;;  %v1529_v19 = vrot.slane %v1492_v10, 4  ;;  %v1522_v20 = vsel %vm1521_vm13, %v1520_v12, %v1488_v61  ;;  %v1526_v21 = vrot.slane %v1491_v11, 5 }
 0x1c7   : > { %v1146_v22 = vrot.slane %v1132_v6, %v2357_v13  ;;  %v1147_v23 = vcombine.high %v1139_v15, %v1139_v15  ;;  %v1525_v24 = vsel %vm1524_vm14, %v1523_v14, %v1522_v20  ;;  %v1495_v25 = vunpack.c.l.b16 %v1771_v16 }
 0x1c8   : > { %v1532_v26 = vrot.slane %v1493_v17, 3  ;;  %v1535_v27 = vrot.slane %v1494_v18, 2  ;;  %v1528_v28 = vsel %vm1527_vm15, %v1526_v21, %v1525_v24  ;;  %v1710_v30 = vrot.slane %v1139_v15, 9 }
 0x1c9   : > { %v1148_v29 = vcombine.high %v1146_v22, %v1146_v22  ;;  %v1711_v32 = vrot.slane %v1147_v23, 9  ;;  %v1531_v33 = vsel %vm1530_vm0, %v1529_v19, %v1528_v28  ;;  %v1538_v34 = vrot.slane %v1495_v25, 1 }
 0x1ca   : > { %v1712_v36 = vrot.slane %v1146_v22, 9  ;;  %v1041_v37 = vmax.f32 %v2374_v42, 0.0  ;;  %v1534_v39 = vsel %vm1533_vm1, %v1532_v26, %v1531_v33  ;;  %v1344_v43 = vmax.f32 %v1139_v15, %v1710_v30 }
 0x1cb   : > { %v1713_v40 = vrot.slane %v1148_v29, 9  ;;  %v1345_v44 = vmax.f32 %v1147_v23, %v1711_v32  ;;  %v1537_v45 = vsel %vm1536_vm2, %v1535_v27, %v1534_v39 }
 0x1cc   : > { %v1346_v46 = vmax.f32 %v1146_v22, %v1712_v36  ;;  %v1053_v47 = vmax.f32 %v1041_v37, %v1043_v41  ;;  %v1540_v49 = vsel %vm1539_vm3, %v1538_v34, %v1537_v45  ;;  %v1780_v35 = vpack.c.bf16 %v1344_v43, %v1344_v43 }
 0x1cd   : > { %v1347_v48 = vmax.f32 %v1148_v29, %v1713_v40  ;;  %v1781_v50 = vpack.c.bf16 %v1345_v44, %v1345_v44  ;;  %v1583_v42 = vpack.c.b16 %v1540_v49, %v1540_v49 }
 0x1ce   : > { %v1782_v52 = vpack.c.bf16 %v1346_v46, %v1346_v46  ;;  %v1149_v53 = vcombine.high %v1053_v47, %v1053_v47  ;;  %v1156_v38 = vrot.slane %v1053_v47, %v2357_v13  ;;  %v1504_v31 = vunpack.c.l.b16 %v1780_v35 }
 0x1cf   : > { %v1783_v54 = vpack.c.bf16 %v1347_v48, %v1347_v48  ;;  %v1505_v51 = vunpack.c.l.b16 %v1781_v50  ;;  %1592 = vst.msk [vmem:[%s2394_s13] sm:$0xf] %vm1591_vm4, %v1583_v42 }
 0x1d0   : > { %v1506_v55 = vunpack.c.l.b16 %v1782_v52  ;;  %v1163_v56 = vrot.slane %v1149_v53, %v2357_v13  ;;  %v1164_v58 = vcombine.high %v1156_v38, %v1156_v38  ;;  %v1714_v59 = vrot.slane %v1156_v38, 9 }
 0x1d1   : > { %v1507_v41 = vunpack.c.l.b16 %v1783_v54  ;;  %v1555_v60 = vrot.slane %v1505_v51, 7 }
 0x1d2   : > { %v1557_v61 = vrot.slane %v1506_v55, 6  ;;  %v1165_v63 = vcombine.high %v1163_v56, %v1163_v56  ;;  %v1715_v0 = vrot.slane %v1164_v58, 9  ;;  %v1716_v1 = vrot.slane %v1163_v56, 9 }
 0x1d3   : > { %v1556_v2 = vsel %vm1521_vm13, %v1555_v60, %v1504_v31  ;;  %v1348_v3 = vmax.f32 %v1156_v38, %v1714_v59  ;;  %v1559_v4 = vrot.slane %v1507_v41, 5 }
 0x1d4   : > { %v1717_v5 = vrot.slane %v1165_v63, 9  ;;  %v1349_v6 = vmax.f32 %v1164_v58, %v1715_v0  ;;  %v1350_v7 = vmax.f32 %v1163_v56, %v1716_v1  ;;  %v1558_v8 = vsel %vm1524_vm14, %v1557_v61, %v1556_v2 }
 0x1d5   : > { %v1784_v9 = vpack.c.bf16 %v1348_v3, %v1348_v3  ;;  %v1560_v18 = vsel %vm1527_vm15, %v1559_v4, %v1558_v8 }
 0x1d6   : > { %v1351_v10 = vmax.f32 %v1165_v63, %v1717_v5  ;;  %v1785_v11 = vpack.c.bf16 %v1349_v6, %v1349_v6  ;;  %v1786_v12 = vpack.c.bf16 %v1350_v7, %v1350_v7 }
 0x1d7   : > { %v1508_v14 = vunpack.c.l.b16 %v1784_v9 }
 0x1d8   : > { %v1787_v15 = vpack.c.bf16 %v1351_v10, %v1351_v10  ;;  %v1509_v16 = vunpack.c.l.b16 %v1785_v11  ;;  %v1510_v17 = vunpack.c.l.b16 %v1786_v12 }
 0x1d9   : > { %v1561_v19 = vrot.slane %v1508_v14, 4 }
 0x1da   : > { %v1511_v20 = vunpack.c.l.b16 %v1787_v15  ;;  %v1563_v21 = vrot.slane %v1509_v16, 3  ;;  %v1565_v23 = vrot.slane %v1510_v17, 2 }
 0x1db   : > { %v1562_v22 = vsel %vm1530_vm0, %v1561_v19, %v1560_v18 }
 0x1dc   : > { %v1564_v24 = vsel %vm1533_vm1, %v1563_v21, %v1562_v22  ;;  %v1567_v25 = vrot.slane %v1511_v20, 1 }
 0x1dd   : > { %v1566_v26 = vsel %vm1536_vm2, %v1565_v23, %v1564_v24 }
 0x1de   : > { %v1568_v27 = vsel %vm1539_vm3, %v1567_v25, %v1566_v26 }
 0x1df   : > { %v1585_v28 = vpack.c.b16 %v1568_v27, %v1568_v27 }
 0x1e1   : > { %1594 = vst.msk [vmem:[%s2394_s13 + $0x8] sm:$0xf] %vm1591_vm4, %v1585_v28 }
 0x1ea   : > { %v1826_v29 = vpop.f32.mrb[4].mxu0 }
 0x1eb   : > { %v999_v30 = vmul.f32 %v1826_v29, %v2343_v57  ;;  %v939_v32 = vpop.f32.mrb[5].mxu0 }
 0x1ec   : > { %v997_v33 = vmul.f32 %v2343_v57, %v939_v32  ;;  %v1827_v34 = vpop.f32.mrb[6].mxu0 }
 0x1ed   : > { %v1022_v36 = vadd.f32 %v2348_v62, %v999_v30  ;;  %v1000_v37 = vmul.f32 %v1827_v34, %v2343_v57  ;;  %v942_v39 = vpop.f32.mrb[7].mxu0 }
 0x1ee   : > { %v1020_v40 = vadd.f32 %v2348_v62, %v997_v33  ;;  %v998_v43 = vmul.f32 %v2343_v57, %v942_v39 }
 0x1ef   : > { %v1038_v44 = vmax.f32 %v1022_v36, 0.0  ;;  %v1023_v45 = vadd.f32 %v2348_v62, %v1000_v37 }
 0x1f0   : > { %v1036_v46 = vmax.f32 %v1020_v40, 0.0  ;;  %v1021_v47 = vadd.f32 %v2348_v62, %v998_v43 }
 0x1f1   : > { %v1834_v49 = vpop.f32.mrb[4].mxu1  ;;  %v1039_v48 = vmax.f32 %v1023_v45, 0.0 }
 0x1f2   : > { %v1007_v35 = vmul.f32 %v1834_v49, %v2343_v57  ;;  %v971_v50 = vpop.f32.mrb[5].mxu1  ;;  %v1050_v42 = vmax.f32 %v1036_v46, %v1038_v44  ;;  %v1037_v52 = vmax.f32 %v1021_v47, 0.0 }
 0x1f3   : > { %v1005_v53 = vmul.f32 %v2343_v57, %v971_v50  ;;  %v1835_v38 = vpop.f32.mrb[6].mxu1 }
 0x1f4   : > { %v1030_v54 = vadd.f32 %v2348_v62, %v1007_v35  ;;  %v1008_v51 = vmul.f32 %v1835_v38, %v2343_v57  ;;  %v974_v55 = vpop.f32.mrb[7].mxu1  ;;  %v1098_v56 = vcombine.high %v1050_v42, %v1050_v42  ;;  %v1105_v58 = vrot.slane %v1050_v42, %v2357_v13 }
 0x1f5   : > { %v1051_v59 = vmax.f32 %v1037_v52, %v1039_v48  ;;  %v1028_v31 = vadd.f32 %v2348_v62, %v1005_v53  ;;  %v1006_v61 = vmul.f32 %v2343_v57, %v974_v55 }
 0x1f6   : > { %v1046_v41 = vmax.f32 %v1030_v54, 0.0  ;;  %v2422_v60 = vadd.f32 %v2348_v62, %v1008_v51  ;;  %v1112_v63 = vrot.slane %v1098_v56, %v2357_v13  ;;  %v1113_v0 = vcombine.high %v1105_v58, %v1105_v58 }
 0x1f7   : > { %v1702_v1 = vrot.slane %v1105_v58, 9  ;;  %v1115_v2 = vcombine.high %v1051_v59, %v1051_v59  ;;  %v1122_v3 = vrot.slane %v1051_v59, %v2357_v13  ;;  %v1044_v4 = vmax.f32 %v1028_v31, 0.0 }
 0x1f8   : > { %v1047_v5 = vmax.f32 %v2422_v60, 0.0  ;;  %v2429_v6 = vadd.f32 %v2348_v62, %v1006_v61  ;;  %v1114_v7 = vcombine.high %v1112_v63, %v1112_v63  ;;  %v1703_v8 = vrot.slane %v1113_v0, 9 }
 0x1f9   : > { %v1704_v9 = vrot.slane %v1112_v63, 9  ;;  %v1336_v10 = vmax.f32 %v1105_v58, %v1702_v1  ;;  %v1129_v11 = vrot.slane %v1115_v2, %v2357_v13  ;;  %v1130_v57 = vcombine.high %v1122_v3, %v1122_v3 }
 0x1fa   : > { %v1706_v12 = vrot.slane %v1122_v3, 9  ;;  %v1054_v14 = vmax.f32 %v1044_v4, %v1046_v41  ;;  %v1705_v15 = vrot.slane %v1114_v7, 9  ;;  %v1337_v16 = vmax.f32 %v1113_v0, %v1703_v8 }
 0x1fb   : > { %v1338_v17 = vmax.f32 %v1112_v63, %v1704_v9  ;;  %v1772_v18 = vpack.c.bf16 %v1336_v10, %v1336_v10  ;;  %v1131_v19 = vcombine.high %v1129_v11, %v1129_v11  ;;  %v1707_v20 = vrot.slane %v1130_v57, 9 }
 0x1fc   : > { %v1708_v21 = vrot.slane %v1129_v11, 9  ;;  %v1340_v22 = vmax.f32 %v1122_v3, %v1706_v12  ;;  %v1339_v23 = vmax.f32 %v1114_v7, %v1705_v15  ;;  %v1773_v62 = vpack.c.bf16 %v1337_v16, %v1337_v16 }
 0x1fd   : > { %v1774_v24 = vpack.c.bf16 %v1338_v17, %v1338_v17  ;;  %v1496_v25 = vunpack.c.l.b16 %v1772_v18  ;;  %v1709_v26 = vrot.slane %v1131_v19, 9  ;;  %v1341_v27 = vmax.f32 %v1130_v57, %v1707_v20 }
 0x1fe   : > { %v1342_v28 = vmax.f32 %v1129_v11, %v1708_v21  ;;  %v1776_v29 = vpack.c.bf16 %v1340_v22, %v1340_v22  ;;  %v1775_v30 = vpack.c.bf16 %v1339_v23, %v1339_v23  ;;  %v1497_v32 = vunpack.c.l.b16 %v1773_v62 }
 0x1ff   : > { %v1498_v33 = vunpack.c.l.b16 %v1774_v24  ;;  %v1166_v34 = vcombine.high %v1054_v14, %v1054_v14  ;;  %v1343_v36 = vmax.f32 %v1131_v19, %v1709_v26  ;;  %v1777_v37 = vpack.c.bf16 %v1341_v27, %v1341_v27 }
 0x200   : > { %v1778_v39 = vpack.c.bf16 %v1342_v28, %v1342_v28  ;;  %v1500_v40 = vunpack.c.l.b16 %v1776_v29  ;;  %v1499_v43 = vunpack.c.l.b16 %v1775_v30  ;;  %v1541_v44 = vrot.slane %v1497_v32, 7 }
 0x201   : > { %v1543_v45 = vrot.slane %v1498_v33, 6  ;;  %v1173_v46 = vrot.slane %v1054_v14, %v2357_v13  ;;  %v1779_v47 = vpack.c.bf16 %v1343_v36, %v1343_v36  ;;  %v1501_v49 = vunpack.c.l.b16 %v1777_v37 }
 0x202   : > { %v1502_v48 = vunpack.c.l.b16 %v1778_v39  ;;  %v1547_v35 = vrot.slane %v1500_v40, 4  ;;  %v1542_v50 = vsel %vm1521_vm13, %v1541_v44, %v1496_v25  ;;  %v1545_v42 = vrot.slane %v1499_v43, 5 }
 0x203   : > { %v1180_v52 = vrot.slane %v1166_v34, %v2357_v13  ;;  %v1181_v53 = vcombine.high %v1173_v46, %v1173_v46  ;;  %v1544_v38 = vsel %vm1524_vm14, %v1543_v45, %v1542_v50  ;;  %v1503_v54 = vunpack.c.l.b16 %v1779_v47 }
 0x204   : > { %v1549_v51 = vrot.slane %v1501_v49, 3  ;;  %v1551_v55 = vrot.slane %v1502_v48, 2  ;;  %v1546_v56 = vsel %vm1527_vm15, %v1545_v42, %v1544_v38  ;;  %v1718_v59 = vrot.slane %v1173_v46, 9 }
 0x205   : > { %v1182_v58 = vcombine.high %v1180_v52, %v1180_v52  ;;  %v1719_v31 = vrot.slane %v1181_v53, 9  ;;  %v1548_v41 = vsel %vm1530_vm0, %v1547_v35, %v1546_v56  ;;  %v1553_v61 = vrot.slane %v1503_v54, 1 }
 0x206   : > { %v1720_v63 = vrot.slane %v1180_v52, 9  ;;  %v1045_v0 = vmax.f32 %v2429_v6, 0.0  ;;  %v1550_v1 = vsel %vm1533_vm1, %v1549_v51, %v1548_v41  ;;  %v1352_v3 = vmax.f32 %v1173_v46, %v1718_v59 }
 0x207   : > { %v1721_v2 = vrot.slane %v1182_v58, 9  ;;  %v1353_v4 = vmax.f32 %v1181_v53, %v1719_v31  ;;  %v1552_v7 = vsel %vm1536_vm2, %v1551_v55, %v1550_v1 }
 0x208   : > { %v1354_v8 = vmax.f32 %v1180_v52, %v1720_v63  ;;  %v1055_v9 = vmax.f32 %v1045_v0, %v1047_v5  ;;  %v1554_v10 = vsel %vm1539_vm3, %v1553_v61, %v1552_v7  ;;  %v1788_v57 = vpack.c.bf16 %v1352_v3, %v1352_v3 }
 0x209   : > { %v1355_v11 = vmax.f32 %v1182_v58, %v1721_v2  ;;  %v1789_v12 = vpack.c.bf16 %v1353_v4, %v1353_v4  ;;  %v1584_v14 = vpack.c.b16 %v1554_v10, %v1554_v10 }
 0x20a   : > { %v1790_v15 = vpack.c.bf16 %v1354_v8, %v1354_v8  ;;  %v1183_v6 = vcombine.high %v1055_v9, %v1055_v9  ;;  %v1190_v16 = vrot.slane %v1055_v9, %v2357_v13  ;;  %v1512_v60 = vunpack.c.l.b16 %v1788_v57 }
 0x20b   : > { %v1791_v17 = vpack.c.bf16 %v1355_v11, %v1355_v11  ;;  %v1513_v18 = vunpack.c.l.b16 %v1789_v12  ;;  %1593 = vst.msk [vmem:[%s2394_s13 + $0x4] sm:$0xf] %vm1591_vm4, %v1584_v14 }
 0x20c   : > { %v1514_v19 = vunpack.c.l.b16 %v1790_v15  ;;  %v1197_v20 = vrot.slane %v1183_v6, %v2357_v13  ;;  %v1198_v21 = vcombine.high %v1190_v16, %v1190_v16  ;;  %v1722_v22 = vrot.slane %v1190_v16, 9 }
 0x20d   : > { %v1515_v5 = vunpack.c.l.b16 %v1791_v17  ;;  %v1569_v23 = vrot.slane %v1513_v18, 7 }
 0x20e   : > { %v1571_v62 = vrot.slane %v1514_v19, 6  ;;  %v1199_v24 = vcombine.high %v1197_v20, %v1197_v20  ;;  %v1723_v25 = vrot.slane %v1198_v21, 9  ;;  %v1724_v26 = vrot.slane %v1197_v20, 9 }
 0x20f   : > { %v1570_v27 = vsel %vm1521_vm13, %v1569_v23, %v1512_v60  ;;  %v1356_v28 = vmax.f32 %v1190_v16, %v1722_v22  ;;  %v1573_v29 = vrot.slane %v1515_v5, 5 }
 0x210   : > { %v1725_v30 = vrot.slane %v1199_v24, 9  ;;  %v1357_v32 = vmax.f32 %v1198_v21, %v1723_v25  ;;  %v1358_v33 = vmax.f32 %v1197_v20, %v1724_v26  ;;  %v1572_v13 = vsel %vm1524_vm14, %v1571_v62, %v1570_v27 }
 0x211   : > { %v1792_v34 = vpack.c.bf16 %v1356_v28, %v1356_v28  ;;  %v1574_v46 = vsel %vm1527_vm15, %v1573_v29, %v1572_v13 }
 0x212   : > { %v1359_v36 = vmax.f32 %v1199_v24, %v1725_v30  ;;  %v1793_v37 = vpack.c.bf16 %v1357_v32, %v1357_v32  ;;  %v1794_v39 = vpack.c.bf16 %v1358_v33, %v1358_v33 }
 0x213   : > { %v1516_v40 = vunpack.c.l.b16 %v1792_v34 }
 0x214   : > { %v1795_v43 = vpack.c.bf16 %v1359_v36, %v1359_v36  ;;  %v1517_v44 = vunpack.c.l.b16 %v1793_v37  ;;  %v1518_v45 = vunpack.c.l.b16 %v1794_v39 }
 0x215   : > { %v1575_v47 = vrot.slane %v1516_v40, 4 }
 0x216   : > { %v1519_v49 = vunpack.c.l.b16 %v1795_v43  ;;  %v1577_v48 = vrot.slane %v1517_v44, 3  ;;  %v1579_v50 = vrot.slane %v1518_v45, 2 }
 0x217   : > { %v1576_v35 = vsel %vm1530_vm0, %v1575_v47, %v1574_v46 }
 0x218   : > { %v1578_v42 = vsel %vm1533_vm1, %v1577_v48, %v1576_v35  ;;  %v1581_v52 = vrot.slane %v1519_v49, 1 }
 0x219   : > { %v1580_v53 = vsel %vm1536_vm2, %v1579_v50, %v1578_v42 }
 0x21a   : > { %v1582_v38 = vsel %vm1539_vm3, %v1581_v52, %v1580_v53 }
 0x21b   : > { %v1586_v54 = vpack.c.b16 %v1582_v38, %v1582_v38 }
 0x21d   : > { %1595 = vst.msk [vmem:[%s2394_s13 + $0xc] sm:$0xf] %vm1591_vm4, %v1586_v54 }
 0x21e   : > { %1916 = shalt.err (!%p1913_p3)
}
 0x21f   : > { %s1917_s6 = scalar_lea.hbm %s2460_s27, 256  ;;  %s1921_s9 = scalar_lea.hbm %s2515_s4, 512 }
 0x220   : > { %p1918_p4 = scmp.ne.s32.totalorder %s2460_s27, %s1917_s6  ;;  %p1922_p9 = scmp.lt.u32.totalorder %s2460_s27, %s2515_s4 }
 0x221   : > { %p1923_p10 = scmp.lt.u32.totalorder %s1921_s9, %s1917_s6  ;;  %p1925_p12 = scmp.lt.u32.totalorder %s1917_s6, %s2460_s27 }
 0x222   : > { %p1919_p7 = pnand %p1918_p4, %p2042_p5 }
 0x223   : > { %p1924_p11 = por %p1923_p10, %p1922_p9 }
 0x224   : > { %p1920_p8 = pneg %p1919_p7 }
 0x225   : > { %p1926_p13 = por %p1925_p12, %p1924_p11 }
 0x227   : > { %p1927_p0 = pnand %p1926_p13, %p1920_p8 }
 0x229   : > { %1930 = shalt.err (!%p1927_p0)
}
 0x22a   : > { %s1978_s13 = smov 4  }
 0x22b   : > { %1848 = dma.vmem_to_hbm [thread:$0]  (%p2042_p5), %s2462_s20, 256, %s2460_s27, %s2468_s19, %s1975_s11, %s1975_s11, %s1978_s13  }
 0x22c PF: > { %p1854_p1 = scmp.ge.s32.totalorder %s1965_s18, 2  ;;  %s1625_s14 = sand.u32 1, %s1953_s15  }
 0x22d   : > { %s1626_s22 = scalar_lea.sflag [#allocation5], %s1625_s14 }
 0x22e   : > { %p1851_p2 = pnand %p1854_p1, %p2046_p6 }
 0x230   : > { %1948 = dma.done.wait (!%p1851_p2), %s1626_s22, 256  }
 0x231   : > { %1950 = vsyncadd (!%p1851_p2), %s1626_s22, 4294967040  ;;  %p14_p3 = scmp.ge.s32.totalorder %s2029_s21, 4   ;;  %s2518_s15 = smov %s1957_s16 }
 0x232   : > { %s2519_s16 = smov %s1961_s17  ;;  %s2520_s17 = smov %s2040_s24 }
 0x233   : > { %s2521_s18 = smov %s2029_s21  ;;  %16 = sbr.rel (!%p14_p3) target bundleno = 3 (0x3), region = 73 }
 0x23a   :  { %1631 = vsyncpa [#allocation5], 1 }
 0x23b   :  { %1633 = vsyncpa [#allocation5 + $0x1], 1 }

</bundles_post_ra>
